<compile_context>
chip_gen: v7x
topology: tpu7x:2x2x1
jax: 0.10.0
libtpu: 0.0.40
codegen_flags: <defaults>
</compile_context>

<pallas_src>
import jax
import jax.numpy as jnp
from jax.experimental import pallas as pl
from jax.experimental.pallas import tpu as pltpu


def _round_up(x, m):
    return (x + m - 1) // m * m


def _vmem_capacity_bytes():
    """Physical VMEM per core (generation-aware), with a v7x-safe fallback."""
    try:
        return int(pltpu.get_tpu_info().vmem_capacity_bytes)
    except Exception:
        return 64 << 20            # v7x has 64 MiB / TC; safe lower bound


def _spec(block_shape, index_map, buffers=None):
    """BlockSpec helper; buffers=1 marks resident / init-only operands."""
    if buffers is not None:
        try:
            return pl.BlockSpec(block_shape, index_map,
                                pipeline_mode=pl.Buffered(buffers))
        except Exception:          # fall back if pipeline_mode unsupported
            pass
    return pl.BlockSpec(block_shape, index_map)


_SMEM = pl.BlockSpec(memory_space=pltpu.SMEM)


# ---------------------------------------------------------------------------
# Hidden-layer kernel: grid = (batch_tiles, n_tiles, T // TC).
# State (mem / has_spiked / spike_time) lives in the revisited output blocks
# across the innermost ("arbitrary") time-chunk axis.
# ---------------------------------------------------------------------------
def _hidden_kernel(alpha_ref, times_ref,                      # SMEM scalars
                   x_ref, w_ref, thresh_ref,                  # VMEM inputs
                   mem0_ref, spiked0_ref, stime0_ref,         # VMEM initial state
                   spike_out, mem_out, spiked_out, stime_out):
    c = pl.program_id(2)                  # time-chunk index (innermost axis)
    tc, bm, kp = x_ref.shape
    tn = w_ref.shape[1]

    # Initialize the carried output blocks once per (batch, N) tile.
    @pl.when(c == 0)
    def _():
        mem_out[...] = mem0_ref[...]
        spiked_out[...] = spiked0_ref[...]
        stime_out[...] = stime0_ref[...]

    # One tall matmul per chunk: (TC*BM, Kp) @ (Kp, TN), bf16 operands,
    # f32 accumulate on the MXU.  Reshapes are layout-free (BM % 8 == 0).
    weighted = jnp.dot(x_ref[...].reshape(tc * bm, kp), w_ref[...],
                       preferred_element_type=jnp.float32).reshape(tc, bm, tn)

    alpha = alpha_ref[0]                  # exp(-dt)       (hoisted to wrapper)
    one_minus_alpha = alpha_ref[1]        # 1 - exp(-dt)
    thresh = thresh_ref[...]              # (1, TN), broadcasts over batch rows

    # Element-wise recurrence over the chunk (static unroll, TC is small).
    for s in range(tc):
        has_spiked = spiked_out[...]
        mask = 1.0 - has_spiked
        mem = alpha * mem_out[...] + one_minus_alpha * weighted[s] * mask
        spike = (mem > thresh).astype(jnp.float32)
        new_spike = spike * mask          # spikes from not-yet-spiked neurons
        stime_out[...] = jnp.where(new_spike > 0.0, times_ref[c * tc + s],
                                   stime_out[...])
        spiked_out[...] = jnp.maximum(has_spiked, spike)
        mem_out[...] = mem - spike * thresh * mask   # soft reset, pre-update mask
        spike_out[s] = spike.astype(spike_out.dtype)


# ---------------------------------------------------------------------------
# Output-layer kernel: (t_min - spike_time) @ W + bias
# ---------------------------------------------------------------------------
def _output_kernel(tmin_ref, stime_ref, w_ref, bias_ref, out_ref):
    time_diff = (tmin_ref[0] - stime_ref[...]).astype(jnp.bfloat16)
    out = jnp.dot(time_diff, w_ref[...], preferred_element_type=jnp.float32)
    out_ref[...] = out + bias_ref[...]


# ---------------------------------------------------------------------------
# Wrappers
# ---------------------------------------------------------------------------
@jax.jit
def snn_ttfs_hidden_forward(x_seq, weight, mem, has_spiked, spike_time, thresh,
                            dt, t_start):
    """Fused hidden-layer forward over all T timesteps.

    x_seq: (T, B, F_in) input per timestep.
    Returns (spike_seq (T,B,N) bf16, mem (B,N), has_spiked (B,N), spike_time (B,N)).
    """
    T, B, K = x_seq.shape
    N = weight.shape[1]

    # --- static tiling choices --------------------------------------------
    Kp = _round_up(K, 128)
    Np = _round_up(N, 128)
    Bp = _round_up(B, 8)
    BM = min(Bp, 128)
    Bp = _round_up(Bp, BM)

    TN = Np                       # N (lane) tile; split only when N is large
    if Np > 512:
        for cand in (512, 256, 128):
            if Np % cand == 0:
                TN = cand
                break

    TC = min(T, 8)                # time-chunk length (must divide T)
    while T % TC != 0:
        TC -= 1

    # --- padded, lane-dense operands (bf16 MXU operands, f32 state) --------
    xp = jnp.zeros((T, Bp, Kp), jnp.bfloat16).at[:, :B, :K].set(
        x_seq.astype(jnp.bfloat16))
    wp = jnp.zeros((Kp, Np), jnp.bfloat16).at[:K, :N].set(
        weight.astype(jnp.bfloat16))
    threshp = jnp.zeros((1, Np), jnp.float32).at[0, :N].set(
        thresh.astype(jnp.float32))
    memp = jnp.zeros((Bp, Np), jnp.float32).at[:B, :N].set(
        mem.astype(jnp.float32))
    spikedp = jnp.zeros((Bp, Np), jnp.float32).at[:B, :N].set(
        has_spiked.astype(jnp.float32))
    stimep = jnp.zeros((Bp, Np), jnp.float32).at[:B, :N].set(
        spike_time.astype(jnp.float32))

    dt_f = jnp.asarray(dt, jnp.float32)
    alpha = jnp.exp(-dt_f)                         # hoisted transcendental
    alpha_s = jnp.stack([alpha, 1.0 - alpha])
    times_s = jnp.asarray(t_start, jnp.float32) + dt_f * jnp.arange(
        T, dtype=jnp.float32)

    grid = (Bp // BM, Np // TN, T // TC)

    # --- generation-aware VMEM budget ---------------------------------------
    vmem_bytes = (2 * TC * BM * Kp * 2          # x tile (bf16, double-buffered)
                  + Kp * TN * 2                 # weight (resident, 1 buffer)
                  + 8 * TN * 4                  # thresh (resident, 1 buffer)
                  + 3 * BM * TN * 4             # initial state (1 buffer each)
                  + 2 * TC * BM * TN * 2        # spike_seq tile (bf16, 2 buffers)
                  + 3 * 2 * BM * TN * 4         # carried state outputs
                  + TC * BM * TN * 4)           # f32 matmul result staging
    vmem_cap = _vmem_capacity_bytes()
    vmem_limit = int(min(max(2 * vmem_bytes, 8 << 20), vmem_cap * 3 // 4))

    cost = pl.CostEstimate(
        flops=2 * T * Bp * Kp * Np,
        transcendentals=0,
        bytes_accessed=(T * Bp * Kp * 2 + (Bp // BM) * Kp * Np * 2
                        + T * Bp * Np * 2 + 6 * Bp * Np * 4))

    out_shapes = (
        jax.ShapeDtypeStruct((T, Bp, Np), jnp.bfloat16),   # spike per step
        jax.ShapeDtypeStruct((Bp, Np), jnp.float32),       # final mem
        jax.ShapeDtypeStruct((Bp, Np), jnp.float32),       # final has_spiked
        jax.ShapeDtypeStruct((Bp, Np), jnp.float32),       # final spike_time
    )

    spike_seq, mem_o, spiked_o, stime_o = pl.pallas_call(
        _hidden_kernel,
        out_shape=out_shapes,
        grid_spec=pltpu.PrefetchScalarGridSpec(
            num_scalar_prefetch=0,
            grid=grid,
            in_specs=[
                _SMEM,                                                  # alpha
                _SMEM,                                                  # times
                _spec((TC, BM, Kp), lambda i, j, c: (c, i, 0)),         # x chunk
                _spec((Kp, TN), lambda i, j, c: (0, j), buffers=1),     # weight
                _spec((1, TN), lambda i, j, c: (0, j), buffers=1),      # thresh
                _spec((BM, TN), lambda i, j, c: (i, j), buffers=1),     # mem0
                _spec((BM, TN), lambda i, j, c: (i, j), buffers=1),     # spiked0
                _spec((BM, TN), lambda i, j, c: (i, j), buffers=1),     # stime0
            ],
            out_specs=(
                pl.BlockSpec((TC, BM, TN), lambda i, j, c: (c, i, j)),  # spikes
                pl.BlockSpec((BM, TN), lambda i, j, c: (i, j)),         # mem
                pl.BlockSpec((BM, TN), lambda i, j, c: (i, j)),         # has_spiked
                pl.BlockSpec((BM, TN), lambda i, j, c: (i, j)),         # spike_time
            ),
        ),
        compiler_params=pltpu.CompilerParams(
            dimension_semantics=("parallel", "parallel", "arbitrary"),
            vmem_limit_bytes=vmem_limit),
        cost_estimate=cost,
        # In-place state update: inputs 5/6/7 (mem0/spiked0/stime0; indices
        # include the two SMEM operands 0,1 and x/w/thresh 2..4) alias the
        # matching f32 (Bp, Np) state outputs 1/2/3.
        input_output_aliases={5: 1, 6: 2, 7: 3},
    )(alpha_s, times_s, xp, wp, threshp, memp, spikedp, stimep)

    return (spike_seq[:, :B, :N], mem_o[:B, :N],
            spiked_o[:B, :N], stime_o[:B, :N])


@jax.jit
def snn_ttfs_output_forward(weight, input_spike_time, bias, t_min=1.0):
    """Output-layer path: (t_min - input_spike_time) @ weight + bias."""
    B, K = input_spike_time.shape
    N = weight.shape[1]

    Kp = _round_up(K, 128)
    Np = _round_up(N, 128)
    Bp = _round_up(B, 8)
    BM = min(Bp, 256)
    Bp = _round_up(Bp, BM)

    stp = jnp.zeros((Bp, Kp), jnp.float32).at[:B, :K].set(
        input_spike_time.astype(jnp.float32))
    wp = jnp.zeros((Kp, Np), jnp.bfloat16).at[:K, :N].set(
        weight.astype(jnp.bfloat16))
    biasp = jnp.zeros((1, Np), jnp.float32).at[0, :N].set(
        bias.astype(jnp.float32))
    tmin_s = jnp.asarray([t_min], jnp.float32)

    grid = (Bp // BM,)
    vmem_bytes = (2 * BM * Kp * 4 + Kp * Np * 2 + 8 * Np * 4
                  + 2 * BM * Np * 4 + BM * Kp * 2)
    vmem_cap = _vmem_capacity_bytes()
    vmem_limit = int(min(max(2 * vmem_bytes, 8 << 20), vmem_cap * 3 // 4))
    cost = pl.CostEstimate(flops=2 * Bp * Kp * Np, transcendentals=0,
                           bytes_accessed=Bp * Kp * 4 + Kp * Np * 2 + Bp * Np * 4)

    out = pl.pallas_call(
        _output_kernel,
        out_shape=jax.ShapeDtypeStruct((Bp, Np), jnp.float32),
        grid_spec=pltpu.PrefetchScalarGridSpec(
            num_scalar_prefetch=0,
            grid=grid,
            in_specs=[
                _SMEM,                                             # t_min
                pl.BlockSpec((BM, Kp), lambda i: (i, 0)),          # spike times
                _spec((Kp, Np), lambda i: (0, 0), buffers=1),      # weight
                _spec((1, Np), lambda i: (0, 0), buffers=1),       # bias
            ],
            out_specs=pl.BlockSpec((BM, Np), lambda i: (i, 0)),
        ),
        compiler_params=pltpu.CompilerParams(
            dimension_semantics=("parallel",),
            vmem_limit_bytes=vmem_limit),
        cost_estimate=cost,
    )(tmin_s, stp, wp, biasp)
    return out[:B, :N]


# ---------------------------------------------------------------------------
# Pure-JAX reference (mirrors the PyTorch forward; bf16 MXU operands like kernel)
# ---------------------------------------------------------------------------
def _hidden_ref_step(x, w, mem, has_spiked, spike_time, thresh, dt, t):
    weighted = jnp.dot(x.astype(jnp.bfloat16), w.astype(jnp.bfloat16),
                       preferred_element_type=jnp.float32)
    alpha = jnp.exp(-jnp.asarray(dt, jnp.float32))
    mask = 1.0 - has_spiked
    mem = alpha * mem + (1.0 - alpha) * weighted * mask
    spike = (mem - thresh[None, :] > 0).astype(jnp.float32)
    new_spikes = (spike > 0) & (has_spiked == 0)
    spike_time = jnp.where(new_spikes, t, spike_time)
    has_spiked = jnp.maximum(has_spiked, spike)
    mem = mem - spike * thresh[None, :] * mask
    return spike, mem, has_spiked, spike_time


# ---------------------------------------------------------------------------
if __name__ == "__main__":
    key = jax.random.PRNGKey(0)
    B, F_IN, F_OUT, T, N_CLS = 8, 64, 32, 16, 10

    k_w, k_x, k_wo = jax.random.split(key, 3)

    weight = (0.1 * jax.random.normal(k_w, (F_IN, F_OUT))).astype(jnp.float32)
    thresh = jnp.ones((F_OUT,), jnp.float32)
    dt = 1.0

    x_seq = jax.random.normal(k_x, (T, B, F_IN)).astype(jnp.float32)

    # set_neuron_state
    mem0 = jnp.zeros((B, F_OUT), jnp.float32)
    spk0 = jnp.zeros((B, F_OUT), jnp.float32)
    st0 = jnp.full((B, F_OUT), jnp.inf, jnp.float32)

    # --- fused hidden-layer forward over T timesteps ---
    spike_seq, mem, has_spiked, spike_time = snn_ttfs_hidden_forward(
        x_seq, weight, mem0, spk0, st0, thresh, dt, 0.0)
    jax.block_until_ready((spike_seq, mem, has_spiked, spike_time))

    # reference
    r_mem, r_spk, r_st = mem0, spk0, st0
    r_spikes = []
    t_cur = 0.0
    for step in range(T):
        r_spike, r_mem, r_spk, r_st = _hidden_ref_step(
            x_seq[step], weight, r_mem, r_spk, r_st, thresh, dt, t_cur)
        r_spikes.append(r_spike)
        t_cur += dt
    r_spike_seq = jnp.stack(r_spikes, axis=0)

    assert jnp.allclose(spike_seq.astype(jnp.float32), r_spike_seq, atol=1e-5)
    assert jnp.allclose(mem, r_mem, atol=1e-4)
    assert jnp.allclose(has_spiked, r_spk)
    finite = ~jnp.isinf(r_st)
    assert jnp.array_equal(jnp.isinf(spike_time), jnp.isinf(r_st))
    assert jnp.allclose(jnp.where(finite, spike_time, 0.0),
                        jnp.where(finite, r_st, 0.0), atol=1e-5)

    # --- output-layer forward ---
    weight_out = (0.1 * jax.random.normal(k_wo, (F_OUT, N_CLS))).astype(jnp.float32)
    bias_out = jnp.zeros((N_CLS,), jnp.float32)
    in_spike_time = jnp.where(jnp.isinf(spike_time), 2.0, spike_time)
    out = snn_ttfs_output_forward(weight_out, in_spike_time, bias_out, 1.0)
    jax.block_until_ready(out)

    ref_out = jnp.dot((1.0 - in_spike_time).astype(jnp.bfloat16),
                      weight_out.astype(jnp.bfloat16),
                      preferred_element_type=jnp.float32) + bias_out[None, :]
    assert jnp.allclose(out, ref_out, atol=1e-4)

    print("KERNEL_OK")
</pallas_src>

<mosaic_0001>
module attributes {stable_mosaic.version = 11 : i64} {
  func.func @_hidden_kernel(%arg0: i32, %arg1: i32, %arg2: i32, %arg3: memref<2xf32, #tpu.memory_space<smem>>, %arg4: memref<16xf32, #tpu.memory_space<smem>>, %arg5: memref<8x8x128xbf16, #tpu.memory_space<vmem>>, %arg6: memref<128x128xbf16, #tpu.memory_space<vmem>>, %arg7: memref<1x128xf32, #tpu.memory_space<vmem>>, %arg8: memref<8x128xf32, #tpu.memory_space<vmem>>, %arg9: memref<8x128xf32, #tpu.memory_space<vmem>>, %arg10: memref<8x128xf32, #tpu.memory_space<vmem>>, %arg11: memref<8x8x128xbf16, #tpu.memory_space<vmem>>, %arg12: memref<8x128xf32, #tpu.memory_space<vmem>>, %arg13: memref<8x128xf32, #tpu.memory_space<vmem>>, %arg14: memref<8x128xf32, #tpu.memory_space<vmem>>) attributes {dimension_semantics = [#tpu.dimension_semantics<parallel>, #tpu.dimension_semantics<parallel>, #tpu.dimension_semantics<arbitrary>], iteration_bounds = array<i64: 1, 1, 2>, scalar_prefetch = 0 : i64, scratch_operands = 0 : i64, tpu.core_type = #tpu.core_type<tc>, window_params = [{transform_indices = @transform_0, window_bounds = array<i64: 2>}, {transform_indices = @transform_1, window_bounds = array<i64: 16>}, {transform_indices = @transform_2, window_bounds = array<i64: 8, 8, 128>}, {pipeline_mode = #tpu.pipeline_mode<synchronous>, transform_indices = @transform_3, window_bounds = array<i64: 128, 128>}, {pipeline_mode = #tpu.pipeline_mode<synchronous>, transform_indices = @transform_4, window_bounds = array<i64: 1, 128>}, {pipeline_mode = #tpu.pipeline_mode<synchronous>, transform_indices = @transform_5, window_bounds = array<i64: 8, 128>}, {pipeline_mode = #tpu.pipeline_mode<synchronous>, transform_indices = @transform_6, window_bounds = array<i64: 8, 128>}, {pipeline_mode = #tpu.pipeline_mode<synchronous>, transform_indices = @transform_7, window_bounds = array<i64: 8, 128>}, {transform_indices = @transform_8, window_bounds = array<i64: 8, 8, 128>}, {transform_indices = @transform_9, window_bounds = array<i64: 8, 128>}, {transform_indices = @transform_10, window_bounds = array<i64: 8, 128>}, {transform_indices = @transform_11, window_bounds = array<i64: 8, 128>}]} {
    %c0_i32 = arith.constant 0 : i32
    %0 = arith.cmpi eq, %arg2, %c0_i32 : i32
    %1 = arith.extui %0 : i1 to i32
    %c0_i32_0 = arith.constant 0 : i32
    %2 = arith.cmpi ne, %1, %c0_i32_0 : i32
    scf.if %2 {
      %c0_146 = arith.constant 0 : index
      %c0_147 = arith.constant 0 : index
      %315 = vector.load %arg8[%c0_146, %c0_147] : memref<8x128xf32, #tpu.memory_space<vmem>>, vector<8x128xf32>
      %c0_148 = arith.constant 0 : index
      %c0_149 = arith.constant 0 : index
      %316 = vector.load %arg12[%c0_148, %c0_149] : memref<8x128xf32, #tpu.memory_space<vmem>>, vector<8x128xf32>
      tpu.vector_store %arg12[%c0_148, %c0_149], %315 {strides = array<i32>} : memref<8x128xf32, #tpu.memory_space<vmem>>, vector<8x128xf32>,
      %c0_150 = arith.constant 0 : index
      %c0_151 = arith.constant 0 : index
      %317 = vector.load %arg9[%c0_150, %c0_151] : memref<8x128xf32, #tpu.memory_space<vmem>>, vector<8x128xf32>
      %c0_152 = arith.constant 0 : index
      %c0_153 = arith.constant 0 : index
      %318 = vector.load %arg13[%c0_152, %c0_153] : memref<8x128xf32, #tpu.memory_space<vmem>>, vector<8x128xf32>
      tpu.vector_store %arg13[%c0_152, %c0_153], %317 {strides = array<i32>} : memref<8x128xf32, #tpu.memory_space<vmem>>, vector<8x128xf32>,
      %c0_154 = arith.constant 0 : index
      %c0_155 = arith.constant 0 : index
      %319 = vector.load %arg10[%c0_154, %c0_155] : memref<8x128xf32, #tpu.memory_space<vmem>>, vector<8x128xf32>
      %c0_156 = arith.constant 0 : index
      %c0_157 = arith.constant 0 : index
      %320 = vector.load %arg14[%c0_156, %c0_157] : memref<8x128xf32, #tpu.memory_space<vmem>>, vector<8x128xf32>
      tpu.vector_store %arg14[%c0_156, %c0_157], %319 {strides = array<i32>} : memref<8x128xf32, #tpu.memory_space<vmem>>, vector<8x128xf32>,
    } else {
    }
    %c0 = arith.constant 0 : index
    %c0_1 = arith.constant 0 : index
    %c0_2 = arith.constant 0 : index
    %3 = vector.load %arg5[%c0, %c0_1, %c0_2] : memref<8x8x128xbf16, #tpu.memory_space<vmem>>, vector<8x8x128xbf16>
    %4 = vector.shape_cast %3 : vector<8x8x128xbf16> to vector<64x128xbf16>
    %c0_3 = arith.constant 0 : index
    %c0_4 = arith.constant 0 : index
    %5 = vector.load %arg6[%c0_3, %c0_4] : memref<128x128xbf16, #tpu.memory_space<vmem>>, vector<128x128xbf16>
    %cst = arith.constant dense<0.000000e+00> : vector<64x128xf32>
    %6 = tpu.matmul %4, %5, %cst {dimension_numbers = #tpu.dot_dimension_numbers<[1], [0], [0], [1], [0, 0, 1, 1], [], []>} : vector<64x128xbf16>, vector<128x128xbf16>, vector<64x128xf32> -> vector<64x128xf32>
    %7 = vector.shape_cast %6 : vector<64x128xf32> to vector<8x8x128xf32>
    %c0_5 = arith.constant 0 : index
    %8 = memref.load %arg3[%c0_5] : memref<2xf32, #tpu.memory_space<smem>>
    %c1 = arith.constant 1 : index
    %9 = memref.load %arg3[%c1] : memref<2xf32, #tpu.memory_space<smem>>
    %c0_6 = arith.constant 0 : index
    %c0_7 = arith.constant 0 : index
    %10 = vector.load %arg7[%c0_6, %c0_7] : memref<1x128xf32, #tpu.memory_space<vmem>>, vector<1x128xf32>
    %c0_8 = arith.constant 0 : index
    %c0_9 = arith.constant 0 : index
    %11 = vector.load %arg13[%c0_8, %c0_9] : memref<8x128xf32, #tpu.memory_space<vmem>>, vector<8x128xf32>
    %cst_10 = arith.constant 1.000000e+00 : f32
    %12 = vector.broadcast %cst_10 : f32 to vector<8x128xf32>
    %13 = arith.subf %12, %11 : vector<8x128xf32>
    %c0_11 = arith.constant 0 : index
    %c0_12 = arith.constant 0 : index
    %14 = vector.load %arg12[%c0_11, %c0_12] : memref<8x128xf32, #tpu.memory_space<vmem>>, vector<8x128xf32>
    %15 = vector.broadcast %8 : f32 to vector<8x128xf32>
    %16 = arith.mulf %15, %14 : vector<8x128xf32>
    %17 = vector.extract_strided_slice %7 {offsets = [0, 0, 0], sizes = [1, 8, 128], strides = [1, 1, 1]} : vector<8x8x128xf32> to vector<1x8x128xf32>
    %18 = vector.shape_cast %17 : vector<1x8x128xf32> to vector<8x128xf32>
    %19 = vector.broadcast %9 : f32 to vector<8x128xf32>
    %20 = arith.mulf %19, %18 : vector<8x128xf32>
    %21 = arith.mulf %20, %13 : vector<8x128xf32>
    %22 = arith.addf %16, %21 : vector<8x128xf32>
    %23 = vector.broadcast %10 : vector<1x128xf32> to vector<8x128xf32>
    %24 = arith.cmpf ogt, %22, %23 : vector<8x128xf32>
    %25 = arith.extui %24 : vector<8x128xi1> to vector<8x128xi32>
    %26 = arith.sitofp %25 : vector<8x128xi32> to vector<8x128xf32>
    %27 = arith.mulf %26, %13 : vector<8x128xf32>
    %cst_13 = arith.constant 0.000000e+00 : f32
    %28 = vector.broadcast %cst_13 : f32 to vector<8x128xf32>
    %29 = arith.cmpf ogt, %27, %28 : vector<8x128xf32>
    %c8_i32 = arith.constant 8 : i32
    %30 = arith.muli %arg2, %c8_i32 : i32
    %c0_i32_14 = arith.constant 0 : i32
    %31 = arith.addi %30, %c0_i32_14 : i32
    %32 = arith.index_cast %31 : i32 to index
    %33 = memref.load %arg4[%32] : memref<16xf32, #tpu.memory_space<smem>>
    %c0_15 = arith.constant 0 : index
    %c0_16 = arith.constant 0 : index
    %34 = vector.load %arg14[%c0_15, %c0_16] : memref<8x128xf32, #tpu.memory_space<vmem>>, vector<8x128xf32>
    %35 = vector.broadcast %33 : f32 to vector<8x128xf32>
    %36 = arith.select %29, %35, %34 : vector<8x128xi1>, vector<8x128xf32>
    %c0_17 = arith.constant 0 : index
    %c0_18 = arith.constant 0 : index
    %37 = vector.load %arg14[%c0_17, %c0_18] : memref<8x128xf32, #tpu.memory_space<vmem>>, vector<8x128xf32>
    tpu.vector_store %arg14[%c0_17, %c0_18], %36 {strides = array<i32>} : memref<8x128xf32, #tpu.memory_space<vmem>>, vector<8x128xf32>,
    %38 = arith.maximumf %11, %26 : vector<8x128xf32>
    %c0_19 = arith.constant 0 : index
    %c0_20 = arith.constant 0 : index
    %39 = vector.load %arg13[%c0_19, %c0_20] : memref<8x128xf32, #tpu.memory_space<vmem>>, vector<8x128xf32>
    tpu.vector_store %arg13[%c0_19, %c0_20], %38 {strides = array<i32>} : memref<8x128xf32, #tpu.memory_space<vmem>>, vector<8x128xf32>,
    %40 = vector.broadcast %10 : vector<1x128xf32> to vector<8x128xf32>
    %41 = arith.mulf %26, %40 : vector<8x128xf32>
    %42 = arith.mulf %41, %13 : vector<8x128xf32>
    %43 = arith.subf %22, %42 : vector<8x128xf32>
    %c0_21 = arith.constant 0 : index
    %c0_22 = arith.constant 0 : index
    %44 = vector.load %arg12[%c0_21, %c0_22] : memref<8x128xf32, #tpu.memory_space<vmem>>, vector<8x128xf32>
    tpu.vector_store %arg12[%c0_21, %c0_22], %43 {strides = array<i32>} : memref<8x128xf32, #tpu.memory_space<vmem>>, vector<8x128xf32>,
    %45 = arith.truncf %26 : vector<8x128xf32> to vector<8x128xbf16>
    %c0_23 = arith.constant 0 : index
    %c0_24 = arith.constant 0 : index
    %c0_25 = arith.constant 0 : index
    %46 = vector.load %arg11[%c0_23, %c0_24, %c0_25] : memref<8x8x128xbf16, #tpu.memory_space<vmem>>, vector<1x8x128xbf16>
    %47 = vector.shape_cast %46 : vector<1x8x128xbf16> to vector<8x128xbf16>
    %48 = vector.shape_cast %45 : vector<8x128xbf16> to vector<1x8x128xbf16>
    tpu.vector_store %arg11[%c0_23, %c0_24, %c0_25], %48 {strides = array<i32>} : memref<8x8x128xbf16, #tpu.memory_space<vmem>>, vector<1x8x128xbf16>,
    %c0_26 = arith.constant 0 : index
    %c0_27 = arith.constant 0 : index
    %49 = vector.load %arg13[%c0_26, %c0_27] : memref<8x128xf32, #tpu.memory_space<vmem>>, vector<8x128xf32>
    %cst_28 = arith.constant 1.000000e+00 : f32
    %50 = vector.broadcast %cst_28 : f32 to vector<8x128xf32>
    %51 = arith.subf %50, %49 : vector<8x128xf32>
    %c0_29 = arith.constant 0 : index
    %c0_30 = arith.constant 0 : index
    %52 = vector.load %arg12[%c0_29, %c0_30] : memref<8x128xf32, #tpu.memory_space<vmem>>, vector<8x128xf32>
    %53 = vector.broadcast %8 : f32 to vector<8x128xf32>
    %54 = arith.mulf %53, %52 : vector<8x128xf32>
    %55 = vector.extract_strided_slice %7 {offsets = [1, 0, 0], sizes = [1, 8, 128], strides = [1, 1, 1]} : vector<8x8x128xf32> to vector<1x8x128xf32>
    %56 = vector.shape_cast %55 : vector<1x8x128xf32> to vector<8x128xf32>
    %57 = vector.broadcast %9 : f32 to vector<8x128xf32>
    %58 = arith.mulf %57, %56 : vector<8x128xf32>
    %59 = arith.mulf %58, %51 : vector<8x128xf32>
    %60 = arith.addf %54, %59 : vector<8x128xf32>
    %61 = vector.broadcast %10 : vector<1x128xf32> to vector<8x128xf32>
    %62 = arith.cmpf ogt, %60, %61 : vector<8x128xf32>
    %63 = arith.extui %62 : vector<8x128xi1> to vector<8x128xi32>
    %64 = arith.sitofp %63 : vector<8x128xi32> to vector<8x128xf32>
    %65 = arith.mulf %64, %51 : vector<8x128xf32>
    %cst_31 = arith.constant 0.000000e+00 : f32
    %66 = vector.broadcast %cst_31 : f32 to vector<8x128xf32>
    %67 = arith.cmpf ogt, %65, %66 : vector<8x128xf32>
    %c8_i32_32 = arith.constant 8 : i32
    %68 = arith.muli %arg2, %c8_i32_32 : i32
    %c1_i32 = arith.constant 1 : i32
    %69 = arith.addi %68, %c1_i32 : i32
    %70 = arith.index_cast %69 : i32 to index
    %71 = memref.load %arg4[%70] : memref<16xf32, #tpu.memory_space<smem>>
    %c0_33 = arith.constant 0 : index
    %c0_34 = arith.constant 0 : index
    %72 = vector.load %arg14[%c0_33, %c0_34] : memref<8x128xf32, #tpu.memory_space<vmem>>, vector<8x128xf32>
    %73 = vector.broadcast %71 : f32 to vector<8x128xf32>
    %74 = arith.select %67, %73, %72 : vector<8x128xi1>, vector<8x128xf32>
    %c0_35 = arith.constant 0 : index
    %c0_36 = arith.constant 0 : index
    %75 = vector.load %arg14[%c0_35, %c0_36] : memref<8x128xf32, #tpu.memory_space<vmem>>, vector<8x128xf32>
    tpu.vector_store %arg14[%c0_35, %c0_36], %74 {strides = array<i32>} : memref<8x128xf32, #tpu.memory_space<vmem>>, vector<8x128xf32>,
    %76 = arith.maximumf %49, %64 : vector<8x128xf32>
    %c0_37 = arith.constant 0 : index
    %c0_38 = arith.constant 0 : index
    %77 = vector.load %arg13[%c0_37, %c0_38] : memref<8x128xf32, #tpu.memory_space<vmem>>, vector<8x128xf32>
    tpu.vector_store %arg13[%c0_37, %c0_38], %76 {strides = array<i32>} : memref<8x128xf32, #tpu.memory_space<vmem>>, vector<8x128xf32>,
    %78 = vector.broadcast %10 : vector<1x128xf32> to vector<8x128xf32>
    %79 = arith.mulf %64, %78 : vector<8x128xf32>
    %80 = arith.mulf %79, %51 : vector<8x128xf32>
    %81 = arith.subf %60, %80 : vector<8x128xf32>
    %c0_39 = arith.constant 0 : index
    %c0_40 = arith.constant 0 : index
    %82 = vector.load %arg12[%c0_39, %c0_40] : memref<8x128xf32, #tpu.memory_space<vmem>>, vector<8x128xf32>
    tpu.vector_store %arg12[%c0_39, %c0_40], %81 {strides = array<i32>} : memref<8x128xf32, #tpu.memory_space<vmem>>, vector<8x128xf32>,
    %83 = arith.truncf %64 : vector<8x128xf32> to vector<8x128xbf16>
    %c1_41 = arith.constant 1 : index
    %c0_42 = arith.constant 0 : index
    %c0_43 = arith.constant 0 : index
    %84 = vector.load %arg11[%c1_41, %c0_42, %c0_43] : memref<8x8x128xbf16, #tpu.memory_space<vmem>>, vector<1x8x128xbf16>
    %85 = vector.shape_cast %84 : vector<1x8x128xbf16> to vector<8x128xbf16>
    %86 = vector.shape_cast %83 : vector<8x128xbf16> to vector<1x8x128xbf16>
    tpu.vector_store %arg11[%c1_41, %c0_42, %c0_43], %86 {strides = array<i32>} : memref<8x8x128xbf16, #tpu.memory_space<vmem>>, vector<1x8x128xbf16>,
    %c0_44 = arith.constant 0 : index
    %c0_45 = arith.constant 0 : index
    %87 = vector.load %arg13[%c0_44, %c0_45] : memref<8x128xf32, #tpu.memory_space<vmem>>, vector<8x128xf32>
    %cst_46 = arith.constant 1.000000e+00 : f32
    %88 = vector.broadcast %cst_46 : f32 to vector<8x128xf32>
    %89 = arith.subf %88, %87 : vector<8x128xf32>
    %c0_47 = arith.constant 0 : index
    %c0_48 = arith.constant 0 : index
    %90 = vector.load %arg12[%c0_47, %c0_48] : memref<8x128xf32, #tpu.memory_space<vmem>>, vector<8x128xf32>
    %91 = vector.broadcast %8 : f32 to vector<8x128xf32>
    %92 = arith.mulf %91, %90 : vector<8x128xf32>
    %93 = vector.extract_strided_slice %7 {offsets = [2, 0, 0], sizes = [1, 8, 128], strides = [1, 1, 1]} : vector<8x8x128xf32> to vector<1x8x128xf32>
    %94 = vector.shape_cast %93 : vector<1x8x128xf32> to vector<8x128xf32>
    %95 = vector.broadcast %9 : f32 to vector<8x128xf32>
    %96 = arith.mulf %95, %94 : vector<8x128xf32>
    %97 = arith.mulf %96, %89 : vector<8x128xf32>
    %98 = arith.addf %92, %97 : vector<8x128xf32>
    %99 = vector.broadcast %10 : vector<1x128xf32> to vector<8x128xf32>
    %100 = arith.cmpf ogt, %98, %99 : vector<8x128xf32>
    %101 = arith.extui %100 : vector<8x128xi1> to vector<8x128xi32>
    %102 = arith.sitofp %101 : vector<8x128xi32> to vector<8x128xf32>
    %103 = arith.mulf %102, %89 : vector<8x128xf32>
    %cst_49 = arith.constant 0.000000e+00 : f32
    %104 = vector.broadcast %cst_49 : f32 to vector<8x128xf32>
    %105 = arith.cmpf ogt, %103, %104 : vector<8x128xf32>
    %c8_i32_50 = arith.constant 8 : i32
    %106 = arith.muli %arg2, %c8_i32_50 : i32
    %c2_i32 = arith.constant 2 : i32
    %107 = arith.addi %106, %c2_i32 : i32
    %108 = arith.index_cast %107 : i32 to index
    %109 = memref.load %arg4[%108] : memref<16xf32, #tpu.memory_space<smem>>
    %c0_51 = arith.constant 0 : index
    %c0_52 = arith.constant 0 : index
    %110 = vector.load %arg14[%c0_51, %c0_52] : memref<8x128xf32, #tpu.memory_space<vmem>>, vector<8x128xf32>
    %111 = vector.broadcast %109 : f32 to vector<8x128xf32>
    %112 = arith.select %105, %111, %110 : vector<8x128xi1>, vector<8x128xf32>
    %c0_53 = arith.constant 0 : index
    %c0_54 = arith.constant 0 : index
    %113 = vector.load %arg14[%c0_53, %c0_54] : memref<8x128xf32, #tpu.memory_space<vmem>>, vector<8x128xf32>
    tpu.vector_store %arg14[%c0_53, %c0_54], %112 {strides = array<i32>} : memref<8x128xf32, #tpu.memory_space<vmem>>, vector<8x128xf32>,
    %114 = arith.maximumf %87, %102 : vector<8x128xf32>
    %c0_55 = arith.constant 0 : index
    %c0_56 = arith.constant 0 : index
    %115 = vector.load %arg13[%c0_55, %c0_56] : memref<8x128xf32, #tpu.memory_space<vmem>>, vector<8x128xf32>
    tpu.vector_store %arg13[%c0_55, %c0_56], %114 {strides = array<i32>} : memref<8x128xf32, #tpu.memory_space<vmem>>, vector<8x128xf32>,
    %116 = vector.broadcast %10 : vector<1x128xf32> to vector<8x128xf32>
    %117 = arith.mulf %102, %116 : vector<8x128xf32>
    %118 = arith.mulf %117, %89 : vector<8x128xf32>
    %119 = arith.subf %98, %118 : vector<8x128xf32>
    %c0_57 = arith.constant 0 : index
    %c0_58 = arith.constant 0 : index
    %120 = vector.load %arg12[%c0_57, %c0_58] : memref<8x128xf32, #tpu.memory_space<vmem>>, vector<8x128xf32>
    tpu.vector_store %arg12[%c0_57, %c0_58], %119 {strides = array<i32>} : memref<8x128xf32, #tpu.memory_space<vmem>>, vector<8x128xf32>,
    %121 = arith.truncf %102 : vector<8x128xf32> to vector<8x128xbf16>
    %c2 = arith.constant 2 : index
    %c0_59 = arith.constant 0 : index
    %c0_60 = arith.constant 0 : index
    %122 = vector.load %arg11[%c2, %c0_59, %c0_60] : memref<8x8x128xbf16, #tpu.memory_space<vmem>>, vector<1x8x128xbf16>
    %123 = vector.shape_cast %122 : vector<1x8x128xbf16> to vector<8x128xbf16>
    %124 = vector.shape_cast %121 : vector<8x128xbf16> to vector<1x8x128xbf16>
    tpu.vector_store %arg11[%c2, %c0_59, %c0_60], %124 {strides = array<i32>} : memref<8x8x128xbf16, #tpu.memory_space<vmem>>, vector<1x8x128xbf16>,
    %c0_61 = arith.constant 0 : index
    %c0_62 = arith.constant 0 : index
    %125 = vector.load %arg13[%c0_61, %c0_62] : memref<8x128xf32, #tpu.memory_space<vmem>>, vector<8x128xf32>
    %cst_63 = arith.constant 1.000000e+00 : f32
    %126 = vector.broadcast %cst_63 : f32 to vector<8x128xf32>
    %127 = arith.subf %126, %125 : vector<8x128xf32>
    %c0_64 = arith.constant 0 : index
    %c0_65 = arith.constant 0 : index
    %128 = vector.load %arg12[%c0_64, %c0_65] : memref<8x128xf32, #tpu.memory_space<vmem>>, vector<8x128xf32>
    %129 = vector.broadcast %8 : f32 to vector<8x128xf32>
    %130 = arith.mulf %129, %128 : vector<8x128xf32>
    %131 = vector.extract_strided_slice %7 {offsets = [3, 0, 0], sizes = [1, 8, 128], strides = [1, 1, 1]} : vector<8x8x128xf32> to vector<1x8x128xf32>
    %132 = vector.shape_cast %131 : vector<1x8x128xf32> to vector<8x128xf32>
    %133 = vector.broadcast %9 : f32 to vector<8x128xf32>
    %134 = arith.mulf %133, %132 : vector<8x128xf32>
    %135 = arith.mulf %134, %127 : vector<8x128xf32>
    %136 = arith.addf %130, %135 : vector<8x128xf32>
    %137 = vector.broadcast %10 : vector<1x128xf32> to vector<8x128xf32>
    %138 = arith.cmpf ogt, %136, %137 : vector<8x128xf32>
    %139 = arith.extui %138 : vector<8x128xi1> to vector<8x128xi32>
    %140 = arith.sitofp %139 : vector<8x128xi32> to vector<8x128xf32>
    %141 = arith.mulf %140, %127 : vector<8x128xf32>
    %cst_66 = arith.constant 0.000000e+00 : f32
    %142 = vector.broadcast %cst_66 : f32 to vector<8x128xf32>
    %143 = arith.cmpf ogt, %141, %142 : vector<8x128xf32>
    %c8_i32_67 = arith.constant 8 : i32
    %144 = arith.muli %arg2, %c8_i32_67 : i32
    %c3_i32 = arith.constant 3 : i32
    %145 = arith.addi %144, %c3_i32 : i32
    %146 = arith.index_cast %145 : i32 to index
    %147 = memref.load %arg4[%146] : memref<16xf32, #tpu.memory_space<smem>>
    %c0_68 = arith.constant 0 : index
    %c0_69 = arith.constant 0 : index
    %148 = vector.load %arg14[%c0_68, %c0_69] : memref<8x128xf32, #tpu.memory_space<vmem>>, vector<8x128xf32>
    %149 = vector.broadcast %147 : f32 to vector<8x128xf32>
    %150 = arith.select %143, %149, %148 : vector<8x128xi1>, vector<8x128xf32>
    %c0_70 = arith.constant 0 : index
    %c0_71 = arith.constant 0 : index
    %151 = vector.load %arg14[%c0_70, %c0_71] : memref<8x128xf32, #tpu.memory_space<vmem>>, vector<8x128xf32>
    tpu.vector_store %arg14[%c0_70, %c0_71], %150 {strides = array<i32>} : memref<8x128xf32, #tpu.memory_space<vmem>>, vector<8x128xf32>,
    %152 = arith.maximumf %125, %140 : vector<8x128xf32>
    %c0_72 = arith.constant 0 : index
    %c0_73 = arith.constant 0 : index
    %153 = vector.load %arg13[%c0_72, %c0_73] : memref<8x128xf32, #tpu.memory_space<vmem>>, vector<8x128xf32>
    tpu.vector_store %arg13[%c0_72, %c0_73], %152 {strides = array<i32>} : memref<8x128xf32, #tpu.memory_space<vmem>>, vector<8x128xf32>,
    %154 = vector.broadcast %10 : vector<1x128xf32> to vector<8x128xf32>
    %155 = arith.mulf %140, %154 : vector<8x128xf32>
    %156 = arith.mulf %155, %127 : vector<8x128xf32>
    %157 = arith.subf %136, %156 : vector<8x128xf32>
    %c0_74 = arith.constant 0 : index
    %c0_75 = arith.constant 0 : index
    %158 = vector.load %arg12[%c0_74, %c0_75] : memref<8x128xf32, #tpu.memory_space<vmem>>, vector<8x128xf32>
    tpu.vector_store %arg12[%c0_74, %c0_75], %157 {strides = array<i32>} : memref<8x128xf32, #tpu.memory_space<vmem>>, vector<8x128xf32>,
    %159 = arith.truncf %140 : vector<8x128xf32> to vector<8x128xbf16>
    %c3 = arith.constant 3 : index
    %c0_76 = arith.constant 0 : index
    %c0_77 = arith.constant 0 : index
    %160 = vector.load %arg11[%c3, %c0_76, %c0_77] : memref<8x8x128xbf16, #tpu.memory_space<vmem>>, vector<1x8x128xbf16>
    %161 = vector.shape_cast %160 : vector<1x8x128xbf16> to vector<8x128xbf16>
    %162 = vector.shape_cast %159 : vector<8x128xbf16> to vector<1x8x128xbf16>
    tpu.vector_store %arg11[%c3, %c0_76, %c0_77], %162 {strides = array<i32>} : memref<8x8x128xbf16, #tpu.memory_space<vmem>>, vector<1x8x128xbf16>,
    %c0_78 = arith.constant 0 : index
    %c0_79 = arith.constant 0 : index
    %163 = vector.load %arg13[%c0_78, %c0_79] : memref<8x128xf32, #tpu.memory_space<vmem>>, vector<8x128xf32>
    %cst_80 = arith.constant 1.000000e+00 : f32
    %164 = vector.broadcast %cst_80 : f32 to vector<8x128xf32>
    %165 = arith.subf %164, %163 : vector<8x128xf32>
    %c0_81 = arith.constant 0 : index
    %c0_82 = arith.constant 0 : index
    %166 = vector.load %arg12[%c0_81, %c0_82] : memref<8x128xf32, #tpu.memory_space<vmem>>, vector<8x128xf32>
    %167 = vector.broadcast %8 : f32 to vector<8x128xf32>
    %168 = arith.mulf %167, %166 : vector<8x128xf32>
    %169 = vector.extract_strided_slice %7 {offsets = [4, 0, 0], sizes = [1, 8, 128], strides = [1, 1, 1]} : vector<8x8x128xf32> to vector<1x8x128xf32>
    %170 = vector.shape_cast %169 : vector<1x8x128xf32> to vector<8x128xf32>
    %171 = vector.broadcast %9 : f32 to vector<8x128xf32>
    %172 = arith.mulf %171, %170 : vector<8x128xf32>
    %173 = arith.mulf %172, %165 : vector<8x128xf32>
    %174 = arith.addf %168, %173 : vector<8x128xf32>
    %175 = vector.broadcast %10 : vector<1x128xf32> to vector<8x128xf32>
    %176 = arith.cmpf ogt, %174, %175 : vector<8x128xf32>
    %177 = arith.extui %176 : vector<8x128xi1> to vector<8x128xi32>
    %178 = arith.sitofp %177 : vector<8x128xi32> to vector<8x128xf32>
    %179 = arith.mulf %178, %165 : vector<8x128xf32>
    %cst_83 = arith.constant 0.000000e+00 : f32
    %180 = vector.broadcast %cst_83 : f32 to vector<8x128xf32>
    %181 = arith.cmpf ogt, %179, %180 : vector<8x128xf32>
    %c8_i32_84 = arith.constant 8 : i32
    %182 = arith.muli %arg2, %c8_i32_84 : i32
    %c4_i32 = arith.constant 4 : i32
    %183 = arith.addi %182, %c4_i32 : i32
    %184 = arith.index_cast %183 : i32 to index
    %185 = memref.load %arg4[%184] : memref<16xf32, #tpu.memory_space<smem>>
    %c0_85 = arith.constant 0 : index
    %c0_86 = arith.constant 0 : index
    %186 = vector.load %arg14[%c0_85, %c0_86] : memref<8x128xf32, #tpu.memory_space<vmem>>, vector<8x128xf32>
    %187 = vector.broadcast %185 : f32 to vector<8x128xf32>
    %188 = arith.select %181, %187, %186 : vector<8x128xi1>, vector<8x128xf32>
    %c0_87 = arith.constant 0 : index
    %c0_88 = arith.constant 0 : index
    %189 = vector.load %arg14[%c0_87, %c0_88] : memref<8x128xf32, #tpu.memory_space<vmem>>, vector<8x128xf32>
    tpu.vector_store %arg14[%c0_87, %c0_88], %188 {strides = array<i32>} : memref<8x128xf32, #tpu.memory_space<vmem>>, vector<8x128xf32>,
    %190 = arith.maximumf %163, %178 : vector<8x128xf32>
    %c0_89 = arith.constant 0 : index
    %c0_90 = arith.constant 0 : index
    %191 = vector.load %arg13[%c0_89, %c0_90] : memref<8x128xf32, #tpu.memory_space<vmem>>, vector<8x128xf32>
    tpu.vector_store %arg13[%c0_89, %c0_90], %190 {strides = array<i32>} : memref<8x128xf32, #tpu.memory_space<vmem>>, vector<8x128xf32>,
    %192 = vector.broadcast %10 : vector<1x128xf32> to vector<8x128xf32>
    %193 = arith.mulf %178, %192 : vector<8x128xf32>
    %194 = arith.mulf %193, %165 : vector<8x128xf32>
    %195 = arith.subf %174, %194 : vector<8x128xf32>
    %c0_91 = arith.constant 0 : index
    %c0_92 = arith.constant 0 : index
    %196 = vector.load %arg12[%c0_91, %c0_92] : memref<8x128xf32, #tpu.memory_space<vmem>>, vector<8x128xf32>
    tpu.vector_store %arg12[%c0_91, %c0_92], %195 {strides = array<i32>} : memref<8x128xf32, #tpu.memory_space<vmem>>, vector<8x128xf32>,
    %197 = arith.truncf %178 : vector<8x128xf32> to vector<8x128xbf16>
    %c4 = arith.constant 4 : index
    %c0_93 = arith.constant 0 : index
    %c0_94 = arith.constant 0 : index
    %198 = vector.load %arg11[%c4, %c0_93, %c0_94] : memref<8x8x128xbf16, #tpu.memory_space<vmem>>, vector<1x8x128xbf16>
    %199 = vector.shape_cast %198 : vector<1x8x128xbf16> to vector<8x128xbf16>
    %200 = vector.shape_cast %197 : vector<8x128xbf16> to vector<1x8x128xbf16>
    tpu.vector_store %arg11[%c4, %c0_93, %c0_94], %200 {strides = array<i32>} : memref<8x8x128xbf16, #tpu.memory_space<vmem>>, vector<1x8x128xbf16>,
    %c0_95 = arith.constant 0 : index
    %c0_96 = arith.constant 0 : index
    %201 = vector.load %arg13[%c0_95, %c0_96] : memref<8x128xf32, #tpu.memory_space<vmem>>, vector<8x128xf32>
    %cst_97 = arith.constant 1.000000e+00 : f32
    %202 = vector.broadcast %cst_97 : f32 to vector<8x128xf32>
    %203 = arith.subf %202, %201 : vector<8x128xf32>
    %c0_98 = arith.constant 0 : index
    %c0_99 = arith.constant 0 : index
    %204 = vector.load %arg12[%c0_98, %c0_99] : memref<8x128xf32, #tpu.memory_space<vmem>>, vector<8x128xf32>
    %205 = vector.broadcast %8 : f32 to vector<8x128xf32>
    %206 = arith.mulf %205, %204 : vector<8x128xf32>
    %207 = vector.extract_strided_slice %7 {offsets = [5, 0, 0], sizes = [1, 8, 128], strides = [1, 1, 1]} : vector<8x8x128xf32> to vector<1x8x128xf32>
    %208 = vector.shape_cast %207 : vector<1x8x128xf32> to vector<8x128xf32>
    %209 = vector.broadcast %9 : f32 to vector<8x128xf32>
    %210 = arith.mulf %209, %208 : vector<8x128xf32>
    %211 = arith.mulf %210, %203 : vector<8x128xf32>
    %212 = arith.addf %206, %211 : vector<8x128xf32>
    %213 = vector.broadcast %10 : vector<1x128xf32> to vector<8x128xf32>
    %214 = arith.cmpf ogt, %212, %213 : vector<8x128xf32>
    %215 = arith.extui %214 : vector<8x128xi1> to vector<8x128xi32>
    %216 = arith.sitofp %215 : vector<8x128xi32> to vector<8x128xf32>
    %217 = arith.mulf %216, %203 : vector<8x128xf32>
    %cst_100 = arith.constant 0.000000e+00 : f32
    %218 = vector.broadcast %cst_100 : f32 to vector<8x128xf32>
    %219 = arith.cmpf ogt, %217, %218 : vector<8x128xf32>
    %c8_i32_101 = arith.constant 8 : i32
    %220 = arith.muli %arg2, %c8_i32_101 : i32
    %c5_i32 = arith.constant 5 : i32
    %221 = arith.addi %220, %c5_i32 : i32
    %222 = arith.index_cast %221 : i32 to index
    %223 = memref.load %arg4[%222] : memref<16xf32, #tpu.memory_space<smem>>
    %c0_102 = arith.constant 0 : index
    %c0_103 = arith.constant 0 : index
    %224 = vector.load %arg14[%c0_102, %c0_103] : memref<8x128xf32, #tpu.memory_space<vmem>>, vector<8x128xf32>
    %225 = vector.broadcast %223 : f32 to vector<8x128xf32>
    %226 = arith.select %219, %225, %224 : vector<8x128xi1>, vector<8x128xf32>
    %c0_104 = arith.constant 0 : index
    %c0_105 = arith.constant 0 : index
    %227 = vector.load %arg14[%c0_104, %c0_105] : memref<8x128xf32, #tpu.memory_space<vmem>>, vector<8x128xf32>
    tpu.vector_store %arg14[%c0_104, %c0_105], %226 {strides = array<i32>} : memref<8x128xf32, #tpu.memory_space<vmem>>, vector<8x128xf32>,
    %228 = arith.maximumf %201, %216 : vector<8x128xf32>
    %c0_106 = arith.constant 0 : index
    %c0_107 = arith.constant 0 : index
    %229 = vector.load %arg13[%c0_106, %c0_107] : memref<8x128xf32, #tpu.memory_space<vmem>>, vector<8x128xf32>
    tpu.vector_store %arg13[%c0_106, %c0_107], %228 {strides = array<i32>} : memref<8x128xf32, #tpu.memory_space<vmem>>, vector<8x128xf32>,
    %230 = vector.broadcast %10 : vector<1x128xf32> to vector<8x128xf32>
    %231 = arith.mulf %216, %230 : vector<8x128xf32>
    %232 = arith.mulf %231, %203 : vector<8x128xf32>
    %233 = arith.subf %212, %232 : vector<8x128xf32>
    %c0_108 = arith.constant 0 : index
    %c0_109 = arith.constant 0 : index
    %234 = vector.load %arg12[%c0_108, %c0_109] : memref<8x128xf32, #tpu.memory_space<vmem>>, vector<8x128xf32>
    tpu.vector_store %arg12[%c0_108, %c0_109], %233 {strides = array<i32>} : memref<8x128xf32, #tpu.memory_space<vmem>>, vector<8x128xf32>,
    %235 = arith.truncf %216 : vector<8x128xf32> to vector<8x128xbf16>
    %c5 = arith.constant 5 : index
    %c0_110 = arith.constant 0 : index
    %c0_111 = arith.constant 0 : index
    %236 = vector.load %arg11[%c5, %c0_110, %c0_111] : memref<8x8x128xbf16, #tpu.memory_space<vmem>>, vector<1x8x128xbf16>
    %237 = vector.shape_cast %236 : vector<1x8x128xbf16> to vector<8x128xbf16>
    %238 = vector.shape_cast %235 : vector<8x128xbf16> to vector<1x8x128xbf16>
    tpu.vector_store %arg11[%c5, %c0_110, %c0_111], %238 {strides = array<i32>} : memref<8x8x128xbf16, #tpu.memory_space<vmem>>, vector<1x8x128xbf16>,
    %c0_112 = arith.constant 0 : index
    %c0_113 = arith.constant 0 : index
    %239 = vector.load %arg13[%c0_112, %c0_113] : memref<8x128xf32, #tpu.memory_space<vmem>>, vector<8x128xf32>
    %cst_114 = arith.constant 1.000000e+00 : f32
    %240 = vector.broadcast %cst_114 : f32 to vector<8x128xf32>
    %241 = arith.subf %240, %239 : vector<8x128xf32>
    %c0_115 = arith.constant 0 : index
    %c0_116 = arith.constant 0 : index
    %242 = vector.load %arg12[%c0_115, %c0_116] : memref<8x128xf32, #tpu.memory_space<vmem>>, vector<8x128xf32>
    %243 = vector.broadcast %8 : f32 to vector<8x128xf32>
    %244 = arith.mulf %243, %242 : vector<8x128xf32>
    %245 = vector.extract_strided_slice %7 {offsets = [6, 0, 0], sizes = [1, 8, 128], strides = [1, 1, 1]} : vector<8x8x128xf32> to vector<1x8x128xf32>
    %246 = vector.shape_cast %245 : vector<1x8x128xf32> to vector<8x128xf32>
    %247 = vector.broadcast %9 : f32 to vector<8x128xf32>
    %248 = arith.mulf %247, %246 : vector<8x128xf32>
    %249 = arith.mulf %248, %241 : vector<8x128xf32>
    %250 = arith.addf %244, %249 : vector<8x128xf32>
    %251 = vector.broadcast %10 : vector<1x128xf32> to vector<8x128xf32>
    %252 = arith.cmpf ogt, %250, %251 : vector<8x128xf32>
    %253 = arith.extui %252 : vector<8x128xi1> to vector<8x128xi32>
    %254 = arith.sitofp %253 : vector<8x128xi32> to vector<8x128xf32>
    %255 = arith.mulf %254, %241 : vector<8x128xf32>
    %cst_117 = arith.constant 0.000000e+00 : f32
    %256 = vector.broadcast %cst_117 : f32 to vector<8x128xf32>
    %257 = arith.cmpf ogt, %255, %256 : vector<8x128xf32>
    %c8_i32_118 = arith.constant 8 : i32
    %258 = arith.muli %arg2, %c8_i32_118 : i32
    %c6_i32 = arith.constant 6 : i32
    %259 = arith.addi %258, %c6_i32 : i32
    %260 = arith.index_cast %259 : i32 to index
    %261 = memref.load %arg4[%260] : memref<16xf32, #tpu.memory_space<smem>>
    %c0_119 = arith.constant 0 : index
    %c0_120 = arith.constant 0 : index
    %262 = vector.load %arg14[%c0_119, %c0_120] : memref<8x128xf32, #tpu.memory_space<vmem>>, vector<8x128xf32>
    %263 = vector.broadcast %261 : f32 to vector<8x128xf32>
    %264 = arith.select %257, %263, %262 : vector<8x128xi1>, vector<8x128xf32>
    %c0_121 = arith.constant 0 : index
    %c0_122 = arith.constant 0 : index
    %265 = vector.load %arg14[%c0_121, %c0_122] : memref<8x128xf32, #tpu.memory_space<vmem>>, vector<8x128xf32>
    tpu.vector_store %arg14[%c0_121, %c0_122], %264 {strides = array<i32>} : memref<8x128xf32, #tpu.memory_space<vmem>>, vector<8x128xf32>,
    %266 = arith.maximumf %239, %254 : vector<8x128xf32>
    %c0_123 = arith.constant 0 : index
    %c0_124 = arith.constant 0 : index
    %267 = vector.load %arg13[%c0_123, %c0_124] : memref<8x128xf32, #tpu.memory_space<vmem>>, vector<8x128xf32>
    tpu.vector_store %arg13[%c0_123, %c0_124], %266 {strides = array<i32>} : memref<8x128xf32, #tpu.memory_space<vmem>>, vector<8x128xf32>,
    %268 = vector.broadcast %10 : vector<1x128xf32> to vector<8x128xf32>
    %269 = arith.mulf %254, %268 : vector<8x128xf32>
    %270 = arith.mulf %269, %241 : vector<8x128xf32>
    %271 = arith.subf %250, %270 : vector<8x128xf32>
    %c0_125 = arith.constant 0 : index
    %c0_126 = arith.constant 0 : index
    %272 = vector.load %arg12[%c0_125, %c0_126] : memref<8x128xf32, #tpu.memory_space<vmem>>, vector<8x128xf32>
    tpu.vector_store %arg12[%c0_125, %c0_126], %271 {strides = array<i32>} : memref<8x128xf32, #tpu.memory_space<vmem>>, vector<8x128xf32>,
    %273 = arith.truncf %254 : vector<8x128xf32> to vector<8x128xbf16>
    %c6 = arith.constant 6 : index
    %c0_127 = arith.constant 0 : index
    %c0_128 = arith.constant 0 : index
    %274 = vector.load %arg11[%c6, %c0_127, %c0_128] : memref<8x8x128xbf16, #tpu.memory_space<vmem>>, vector<1x8x128xbf16>
    %275 = vector.shape_cast %274 : vector<1x8x128xbf16> to vector<8x128xbf16>
    %276 = vector.shape_cast %273 : vector<8x128xbf16> to vector<1x8x128xbf16>
    tpu.vector_store %arg11[%c6, %c0_127, %c0_128], %276 {strides = array<i32>} : memref<8x8x128xbf16, #tpu.memory_space<vmem>>, vector<1x8x128xbf16>,
    %c0_129 = arith.constant 0 : index
    %c0_130 = arith.constant 0 : index
    %277 = vector.load %arg13[%c0_129, %c0_130] : memref<8x128xf32, #tpu.memory_space<vmem>>, vector<8x128xf32>
    %cst_131 = arith.constant 1.000000e+00 : f32
    %278 = vector.broadcast %cst_131 : f32 to vector<8x128xf32>
    %279 = arith.subf %278, %277 : vector<8x128xf32>
    %c0_132 = arith.constant 0 : index
    %c0_133 = arith.constant 0 : index
    %280 = vector.load %arg12[%c0_132, %c0_133] : memref<8x128xf32, #tpu.memory_space<vmem>>, vector<8x128xf32>
    %281 = vector.broadcast %8 : f32 to vector<8x128xf32>
    %282 = arith.mulf %281, %280 : vector<8x128xf32>
    %283 = vector.extract_strided_slice %7 {offsets = [7, 0, 0], sizes = [1, 8, 128], strides = [1, 1, 1]} : vector<8x8x128xf32> to vector<1x8x128xf32>
    %284 = vector.shape_cast %283 : vector<1x8x128xf32> to vector<8x128xf32>
    %285 = vector.broadcast %9 : f32 to vector<8x128xf32>
    %286 = arith.mulf %285, %284 : vector<8x128xf32>
    %287 = arith.mulf %286, %279 : vector<8x128xf32>
    %288 = arith.addf %282, %287 : vector<8x128xf32>
    %289 = vector.broadcast %10 : vector<1x128xf32> to vector<8x128xf32>
    %290 = arith.cmpf ogt, %288, %289 : vector<8x128xf32>
    %291 = arith.extui %290 : vector<8x128xi1> to vector<8x128xi32>
    %292 = arith.sitofp %291 : vector<8x128xi32> to vector<8x128xf32>
    %293 = arith.mulf %292, %279 : vector<8x128xf32>
    %cst_134 = arith.constant 0.000000e+00 : f32
    %294 = vector.broadcast %cst_134 : f32 to vector<8x128xf32>
    %295 = arith.cmpf ogt, %293, %294 : vector<8x128xf32>
    %c8_i32_135 = arith.constant 8 : i32
    %296 = arith.muli %arg2, %c8_i32_135 : i32
    %c7_i32 = arith.constant 7 : i32
    %297 = arith.addi %296, %c7_i32 : i32
    %298 = arith.index_cast %297 : i32 to index
    %299 = memref.load %arg4[%298] : memref<16xf32, #tpu.memory_space<smem>>
    %c0_136 = arith.constant 0 : index
    %c0_137 = arith.constant 0 : index
    %300 = vector.load %arg14[%c0_136, %c0_137] : memref<8x128xf32, #tpu.memory_space<vmem>>, vector<8x128xf32>
    %301 = vector.broadcast %299 : f32 to vector<8x128xf32>
    %302 = arith.select %295, %301, %300 : vector<8x128xi1>, vector<8x128xf32>
    %c0_138 = arith.constant 0 : index
    %c0_139 = arith.constant 0 : index
    %303 = vector.load %arg14[%c0_138, %c0_139] : memref<8x128xf32, #tpu.memory_space<vmem>>, vector<8x128xf32>
    tpu.vector_store %arg14[%c0_138, %c0_139], %302 {strides = array<i32>} : memref<8x128xf32, #tpu.memory_space<vmem>>, vector<8x128xf32>,
    %304 = arith.maximumf %277, %292 : vector<8x128xf32>
    %c0_140 = arith.constant 0 : index
    %c0_141 = arith.constant 0 : index
    %305 = vector.load %arg13[%c0_140, %c0_141] : memref<8x128xf32, #tpu.memory_space<vmem>>, vector<8x128xf32>
    tpu.vector_store %arg13[%c0_140, %c0_141], %304 {strides = array<i32>} : memref<8x128xf32, #tpu.memory_space<vmem>>, vector<8x128xf32>,
    %306 = vector.broadcast %10 : vector<1x128xf32> to vector<8x128xf32>
    %307 = arith.mulf %292, %306 : vector<8x128xf32>
    %308 = arith.mulf %307, %279 : vector<8x128xf32>
    %309 = arith.subf %288, %308 : vector<8x128xf32>
    %c0_142 = arith.constant 0 : index
    %c0_143 = arith.constant 0 : index
    %310 = vector.load %arg12[%c0_142, %c0_143] : memref<8x128xf32, #tpu.memory_space<vmem>>, vector<8x128xf32>
    tpu.vector_store %arg12[%c0_142, %c0_143], %309 {strides = array<i32>} : memref<8x128xf32, #tpu.memory_space<vmem>>, vector<8x128xf32>,
    %311 = arith.truncf %292 : vector<8x128xf32> to vector<8x128xbf16>
    %c7 = arith.constant 7 : index
    %c0_144 = arith.constant 0 : index
    %c0_145 = arith.constant 0 : index
    %312 = vector.load %arg11[%c7, %c0_144, %c0_145] : memref<8x8x128xbf16, #tpu.memory_space<vmem>>, vector<1x8x128xbf16>
    %313 = vector.shape_cast %312 : vector<1x8x128xbf16> to vector<8x128xbf16>
    %314 = vector.shape_cast %311 : vector<8x128xbf16> to vector<1x8x128xbf16>
    tpu.vector_store %arg11[%c7, %c0_144, %c0_145], %314 {strides = array<i32>} : memref<8x8x128xbf16, #tpu.memory_space<vmem>>, vector<1x8x128xbf16>,
    return
  }
  func.func @transform_0(%arg0: i32, %arg1: i32, %arg2: i32) -> i32 {
    %c0_i32 = arith.constant 0 : i32
    %c0_i32_0 = arith.constant 0 : i32
    return %c0_i32 : i32
  }
  func.func @transform_1(%arg0: i32, %arg1: i32, %arg2: i32) -> i32 {
    %c0_i32 = arith.constant 0 : i32
    %c0_i32_0 = arith.constant 0 : i32
    return %c0_i32 : i32
  }
  func.func @transform_2(%arg0: i32, %arg1: i32, %arg2: i32) -> (i32, i32, i32) {
    %c0_i32 = arith.constant 0 : i32
    %c0_i32_0 = arith.constant 0 : i32
    return %arg2, %arg0, %c0_i32 : i32, i32, i32
  }
  func.func @transform_3(%arg0: i32, %arg1: i32, %arg2: i32) -> (i32, i32) {
    %c0_i32 = arith.constant 0 : i32
    %c0_i32_0 = arith.constant 0 : i32
    return %c0_i32, %arg1 : i32, i32
  }
  func.func @transform_4(%arg0: i32, %arg1: i32, %arg2: i32) -> (i32, i32) {
    %c0_i32 = arith.constant 0 : i32
    %c0_i32_0 = arith.constant 0 : i32
    return %c0_i32, %arg1 : i32, i32
  }
  func.func @transform_5(%arg0: i32, %arg1: i32, %arg2: i32) -> (i32, i32) {
    %c0_i32 = arith.constant 0 : i32
    return %arg0, %arg1 : i32, i32
  }
  func.func @transform_6(%arg0: i32, %arg1: i32, %arg2: i32) -> (i32, i32) {
    %c0_i32 = arith.constant 0 : i32
    return %arg0, %arg1 : i32, i32
  }
  func.func @transform_7(%arg0: i32, %arg1: i32, %arg2: i32) -> (i32, i32) {
    %c0_i32 = arith.constant 0 : i32
    return %arg0, %arg1 : i32, i32
  }
  func.func @transform_8(%arg0: i32, %arg1: i32, %arg2: i32) -> (i32, i32, i32) {
    %c0_i32 = arith.constant 0 : i32
    return %arg2, %arg0, %arg1 : i32, i32, i32
  }
  func.func @transform_9(%arg0: i32, %arg1: i32, %arg2: i32) -> (i32, i32) {
    %c0_i32 = arith.constant 0 : i32
    return %arg0, %arg1 : i32, i32
  }
  func.func @transform_10(%arg0: i32, %arg1: i32, %arg2: i32) -> (i32, i32) {
    %c0_i32 = arith.constant 0 : i32
    return %arg0, %arg1 : i32, i32
  }
  func.func @transform_11(%arg0: i32, %arg1: i32, %arg2: i32) -> (i32, i32) {
    %c0_i32 = arith.constant 0 : i32
    return %arg0, %arg1 : i32, i32
  }
}

</mosaic_0001>

<bundles_post_ra>
// kernel: snn_ttfs_hidden_forward.1
= control target key start
LH: loop header
LB: loop body
LE: loop exit
PB: predicated region body
PF: predicated region fallthrough
CT: control target
= control target key end

     0   :  { %s2020_s0 = inlined_call_operand.vmem [shape: f32[2], index: 0, kind: input, shape index: {}]   ;;  %s2021_s1 = inlined_call_operand.vmem [shape: f32[16], index: 1, kind: input, shape index: {}]   ;;  %s2022_s2 = inlined_call_operand.vmem [shape: bf16[16,8,128], index: 2, kind: input, shape index: {}]   ;;  %s2023_s3 = inlined_call_operand.vmem [shape: bf16[128,128], index: 3, kind: input, shape index: {}]   ;;  %s2024_s4 = inlined_call_operand.vmem [shape: f32[1,128], index: 4, kind: input, shape index: {}]   ;;  %s2025_s5 = inlined_call_operand.vmem [shape: f32[8,128], index: 5, kind: input, shape index: {}, may-alias: {5,9}]   ;;  %s2026_s6 = inlined_call_operand.vmem [shape: f32[8,128], index: 6, kind: input, shape index: {}, may-alias: {6,10}]   ;;  %s2027_s7 = inlined_call_operand.vmem [shape: f32[8,128], index: 7, kind: input, shape index: {}, may-alias: {7,11}]   ;;  %s2028_s8 = inlined_call_operand.hbm [shape: bf16[16,8,128], index: 8, kind: output, shape index: {0}]   ;;  %s2029_s9 = inlined_call_operand.vmem [shape: f32[8,128], index: 9, kind: output, shape index: {1}, may-alias: {5,9}]   ;;  %s2030_s10 = inlined_call_operand.vmem [shape: f32[8,128], index: 10, kind: output, shape index: {2}, may-alias: {6,10}]   ;;  %s2031_s11 = inlined_call_operand.vmem [shape: f32[8,128], index: 11, kind: output, shape index: {3}, may-alias: {7,11}]  }
   0x1   :  { %2039 = sst [smem:[#allocation14_spill]] %s2020_s0 }
   0x2   :  { %2040 = sst [smem:[#allocation15_spill]] %s2021_s1 }
   0x3   :  { %2041 = sst [smem:[#allocation16_spill]] %s2022_s2 }
   0x4   :  { %17 = vsyncpa [#allocation4], 0 }
   0x5   :  { %18 = vsyncpa [#allocation6], 0 }
   0x6   :  { %19 = vsyncpa [#allocation3], 0 }
   0x7   :  { %21 = vsyncpa [#allocation3 + $0x1], 0  ;;  %s1713_s17 = smov 0   ;;  %s1715_s18 = smov 0  }
   0x8   :  { %s1717_s19 = smov 0   ;;  %s1719_s20 = smov 0  }
   0x9   :  { %s1721_s21 = smov 0   ;;  %s1723_s22 = smov 0  }
   0xa LB: > { %2042 = sst [smem:[#allocation11_spill]] %s1641_s21  ;;  %s1329_s23 = sadd.s32 4294967295, %s1645_s22   ;;  %s1645_s22 = sphi %s1723_s22, %s27_s22   ;;  %s1641_s21 = sphi %s1721_s21, %s2060_s21   ;;  %s1637_s20 = sphi %s1719_s20, %s2059_s20   ;;  %s1633_s19 = sphi %s1717_s19, %s2063_s19   ;;  %s1629_s18 = sphi %s1715_s18, %s2062_s18   ;;  %s1625_s17 = sphi %s1713_s17, %s2061_s17  }
   0xb   : > { %s1330_s24 = sadd.s32 4294967294, %s1645_s22   ;;  %s39_s25 = sadd.s32 1, %s1641_s21 }
   0xc   : > { %s263_s26 = sadd.s32 1, %s1633_s19  ;;  %p40_p0 = scmp.ge.s32.totalorder %s39_s25, 2 }
   0xd   : > { %p273_p1 = scmp.ne.s32.totalorder %s1633_s19, %s1629_s18  ;;  %p274_p2 = scmp.eq.s32.totalorder %s1329_s23, 1 }
   0xe   : > { %p279_p3 = scmp.ne.s32.totalorder %s1629_s18, %s1625_s17  ;;  %s2065_s25 = smov (%p40_p0, %s39_s25), 0 }
   0xf   : > { %2043 = sst [smem:[#allocation12_spill]] %s2065_s25  ;;  %p1753_p4 = por %p274_p2, %p273_p1 }
  0x10   : > { %p280_p5 = scmp.eq.s32.totalorder %s1330_s24, 1  ;;  %s256_s28 = ssub.s32 %s1641_s21, %s2065_s25 }
  0x11   : > { %s2044_s27 = scalar_select %p1753_p4, 1, 0 }
  0x12   : > { %p1331_p6 = scmp.ge.s32.totalorder %s1645_s22, 1  ;;  %p261_p7 = scmp.eq.s32.totalorder %s256_s28, 0 }
  0x13   : > { %p1760_p8 = por %p280_p5, %p279_p3  ;;  %p371_p9 = scmp.lt.s32.totalorder %s1645_s22, 3 }
  0x14   : > { %s1766_s30 = scalar_select %p261_p7, %s1633_s19, %s263_s26  }
  0x15   : > { %s2045_s29 = scalar_select %p1760_p8, 1, 0 }
  0x16   : > { %2046 = sst [smem:[#allocation13_spill]] %s1766_s30  ;;  %p1768_p10 = pnand %p1331_p6, %p371_p9 }
  0x17   : > { %p1772_p11 = scmp.eq.s32.totalorder %s1329_s23, 0  ;;  %s2049_s0 = sld [smem:[#allocation14_spill]] }
  0x18   : > { %s2047_s12 = scalar_select %p1768_p10, 1, 0 }
  0x19   : > { %s2048_s13 = scalar_select %p1772_p11, 1, 0 }
  0x1a   : > { %p1448_p12 = pneg %p1768_p10  ;;  %s2050_s1 = sld [smem:[#allocation15_spill]] }
  0x1c   : > { %p1786_p13 = pnand %p1772_p11, %p1448_p12 }
  0x1d   : > { %s384_s16 = sshll.u32 %s2049_s0, 4  ;;  %s385_s16 = int_to_ptr.vmem [resolvable:$true] %s384_s16 }
  0x1e   : > { %s1529_s23 = scalar_lea.vmem %s385_s16, 16  ;;  %p1531_p1 = pneg %p1786_p13 }
  0x1f   : > { %p1530_p0 = scmp.ne.s32.totalorder %s385_s16, %s1529_s23  ;;  %p1537_p5 = scmp.lt.s32.totalorder %s385_s16, %s385_s16 }
  0x20   : > { %s395_s26 = sshll.u32 %s2050_s1, 4  ;;  %p1538_p6 = scmp.lt.s32.totalorder %s1529_s23, %s1529_s23  ;;  %s396_s26 = int_to_ptr.vmem [resolvable:$true] %s395_s26 }
  0x21   : > { %p1532_p2 = pnand %p1531_p1, %p1530_p0 }
  0x22   : > { %p1539_p7 = por %p1538_p6, %p1537_p5 }
  0x23   : > { %p1533_p3 = pneg %p1532_p2 }
  0x25   : > { %p1540_p9 = pnand %p1539_p7, %p1533_p3 }
  0x27   : > { %1543 = shalt.err (!%p1540_p9)
}
  0x28   : > { %s1647_s14 = smov [#allocation2]   ;;  %s1544_s15 = scalar_lea.vmem %s396_s26, 16 }
  0x29   : > { %1451 = dma.vmem_to_smem (!%p1786_p13), %s385_s16, 16, %s1647_s14, [#allocation4]  }
  0x2a   : > { %p1545_p12 = scmp.ne.s32.totalorder %s396_s26, %s1544_s15  ;;  %p1552_p11 = scmp.lt.s32.totalorder %s396_s26, %s396_s26 }
  0x2b   : > { %p1553_p10 = scmp.lt.s32.totalorder %s1544_s15, %s1544_s15 }
  0x2c   : > { %p1547_p8 = pnand %p1545_p12, %p1531_p1 }
  0x2d   : > { %p1554_p0 = por %p1553_p10, %p1552_p11 }
  0x2e   : > { %p1548_p4 = pneg %p1547_p8 }
  0x30   : > { %p1555_p2 = pnand %p1554_p0, %p1548_p4 }
  0x32   : > { %1558 = shalt.err (!%p1555_p2)
}
  0x33   : > { %s1648_s24 = smov [#allocation5]   ;;  %p2052_p3 = scmp.ne.s32.totalorder %s2047_s12, 0 }
  0x34   : > { %1454 = dma.vmem_to_smem (!%p1786_p13), %s396_s26, 16, %s1648_s24, [#allocation6]  }
  0x35   : > { %463 = sbr.rel (%p2052_p3) target bundleno = 435 (0x1b3), region = 52  ;;  %p2053_p5 = scmp.ne.s32.totalorder (!%p2052_p3), %s2048_s13, 0 }
  0x3c   : > { %1612 = dma.done.wait (%p2053_p5), [#allocation4], 16  }
  0x3d   : > { %1614 = vsyncadd (%p2053_p5), [#allocation4], 4294967280 }
  0x3e   : > { %1616 = dma.done.wait (%p2053_p5), [#allocation6], 16  }
  0x3f   : > { %1618 = vsyncadd (%p2053_p5), [#allocation6], 4294967280 }
  0x40   : > { %473 = sfence }
  0x41   : > { %s2038_s25 = sand.u32 1, %s1629_s18   ;;  %s1808_s16 = sshll.u32 %s1637_s20, 3 }
  0x42   : > { %s1343_s12 = sshll.u32 %s2038_s25, 5  ;;  %p561_p4 = scmp.lt.s32.totalorder %s1808_s16, 15 }
  0x43   : > { %s2054_s2 = sld [smem:[#allocation16_spill]]  ;;  %s1819_s13 = scalar_lea.vmem [#allocation7], %s1343_s12 }
  0x44   : > { %s562_s28 = scalar_select %p561_p4, %s1808_s16, 15 }
  0x45   : > { %p1346_p8 = scmp.ne.s32.totalorder %s1637_s20, 0 }
  0x46   : > { %s1345_s26 = sshll.u32 %s562_s28, 2  ;;  %v624_v0 = vld [vmem:[%s2025_s5] sm:$0xff] (!%p1346_p8) }
  0x47   : > { %623 = sbr.rel (%p1346_p8) target bundleno = 78 (0x4e), region = 64  ;;  %v626_v1 = vld [vmem:[%s2026_s6] sm:$0xff] (!%p1346_p8)  ;;  %625 = vst [vmem:[%s2029_s9] sm:$0xff] (!%p1346_p8), %v624_v0 }
  0x48   : > { %v628_v2 = vld [vmem:[%s2027_s7] sm:$0xff] (!%p1346_p8)  ;;  %627 = vst [vmem:[%s2030_s10] sm:$0xff] (!%p1346_p8), %v626_v1 }
  0x49   : > { %s1817_s15 = scalar_lea.vmem %s2054_s2, %s1345_s26  ;;  %629 = vst [vmem:[%s2031_s11] sm:$0xff] (!%p1346_p8), %v628_v2 }
  0x4e PF: > { %v1517_v3 = vld [vmem:[%s2023_s3] sm:$0xff]   ;;  %v1518_v4 = vld [vmem:[%s2023_s3 + $0x8] sm:$0xff]   ;;  %v1519_v5 = vld [vmem:[%s2023_s3 + $0x10] sm:$0xff]   ;;  %s1359_s24 = sld [smem:[#allocation2 + $0x1]]  ;;  %s791_s28 = sld [smem:[#allocation2]]  ;;  %v1649_v35 = vmov 0.0  }
  0x4f   : > { %1398 = vmatprep.subr.bf16.mxu0 %v1517_v3  ;;  %1422 = vmatprep.subr.bf16.mxu1 %v1517_v3  ;;  %v1520_v6 = vld [vmem:[%s2023_s3 + $0x18] sm:$0xff]   ;;  %v1525_v7 = vld [vmem:[%s1817_s15] sm:$0xff]   ;;  %v1527_v8 = vld [vmem:[%s1817_s15 + $0x10] sm:$0xff]   ;;  %s840_s14 = sadd.s32 1, %s1808_s16  ;;  %s815_s0 = sld [smem:[#allocation5 + %s1808_s16]] }
  0x50   : > { %1399 = vmatpush3.bf16.msra.mxu0 %v1517_v3  ;;  %1430 = vmatpush3.bf16.msra.mxu1 %v1517_v3  ;;  %v1521_v9 = vld [vmem:[%s2023_s3 + $0x20] sm:$0xff]   ;;  %v1522_v10 = vld [vmem:[%s2023_s3 + $0x28] sm:$0xff]   ;;  %v1523_v11 = vld [vmem:[%s2023_s3 + $0x30] sm:$0xff]   ;;  %s841_s1 = sld [smem:[#allocation5 + %s840_s14]]  ;;  %s894_s2 = sadd.s32 3, %s1808_s16 }
  0x51   : > { %1400 = vmatprep.subr.bf16.mxu0 %v1518_v4  ;;  %1423 = vmatprep.subr.bf16.mxu1 %v1518_v4  ;;  %v1524_v12 = vld [vmem:[%s2023_s3 + $0x38] sm:$0xff]   ;;  %v1526_v13 = vld [vmem:[%s1817_s15 + $0x8] sm:$0xff]   ;;  %v794_v15 = vld [vmem:[%s2030_s10] sm:$0xff]  ;;  %s895_s30 = sld [smem:[#allocation5 + %s894_s2]]  ;;  %s921_s23 = sadd.s32 4, %s1808_s16 }
  0x52   : > { %1414 = vmatprep.mubr.bf16.mxu0 %v1525_v7  ;;  %1418 = vmatprep.mubr.bf16.mxu1 %v1527_v8  ;;  %v1528_v14 = vld [vmem:[%s1817_s15 + $0x18] sm:$0xff]   ;;  %v796_v17 = vld [vmem:[%s2029_s9] sm:$0xff]  ;;  %v795_v20 = vsub.f32 1.0, %v794_v15  ;;  %s922_s26 = sld [smem:[#allocation5 + %s921_s23]]  ;;  %s948_s15 = sadd.s32 5, %s1808_s16 }
  0x53   : > { %v1893_v33 = vld [vmem:[%s2024_s4] ss:$0 sm:$0xff]  ;;  %s949_s12 = sld [smem:[#allocation5 + %s948_s15]]  ;;  %s975_s14 = sadd.s32 6, %s1808_s16 }
  0x54   : > { %1401 = vmatpush3.bf16.msra.mxu0 %v1518_v4  ;;  %1431 = vmatpush3.bf16.msra.mxu1 %v1518_v4  ;;  %v1871_v16 = vstv %s1359_s24  ;;  %v1876_v18 = vstv %s791_s28  ;;  %v816_v48 = vld [vmem:[%s2031_s11] sm:$0xff]  ;;  %s867_s24 = sadd.s32 2, %s1808_s16  ;;  %s1385_s25 = sshll.u32 %s1637_s20, 9 }
  0x55   : > { %1402 = vmatprep.subr.bf16.mxu0 %v1519_v5  ;;  %1424 = vmatprep.subr.bf16.mxu1 %v1519_v5  ;;  %v798_v25 = vmul.f32 %v1876_v18, %v796_v17  ;;  %v817_v49 = vstv %s815_s0  ;;  %s868_s28 = sld [smem:[#allocation5 + %s867_s24]]  ;;  %s1054_s24 = sshll.u32 %s1819_s13, 4  ;;  %s1959_s24 = int_to_ptr.vmem [resolvable:$true] %s1054_s24 }
  0x56   : > { %v843_v51 = vstv %s841_s1  ;;  %s976_s0 = sld [smem:[#allocation5 + %s975_s14]]  ;;  %s1002_s1 = sadd.s32 7, %s1808_s16 }
  0x57   : > { %v897_v17 = vstv %s895_s30  ;;  %s1003_s21 = sld [smem:[#allocation5 + %s1002_s1]]  ;;  %s1957_s2 = scalar_lea.hbm %s2028_s8, %s1385_s25 }
  0x58   : > { %1403 = vmatpush3.bf16.msra.mxu0 %v1519_v5  ;;  %1432 = vmatpush3.bf16.msra.mxu1 %v1519_v5  ;;  %s2055_s23 = sand.u32 1, %s1629_s18   ;;  %s1559_s15 = scalar_lea.vmem %s1959_s24, 512 }
  0x59   : > { %1404 = vmatprep.subr.bf16.mxu0 %v1520_v6  ;;  %1425 = vmatprep.subr.bf16.mxu1 %v1520_v6  ;;  %p1560_p10 = scmp.ne.s32.totalorder %s1959_s24, %s1559_s15  ;;  %p2056_p11 = scmp.ne.s32.totalorder %s2044_s27, 0 }
  0x5b   : > { %v870_v2 = vstv %s868_s28  ;;  %p1561_p13 = pnand %p1560_p10, %p2056_p11 }
  0x5c   : > { %1405 = vmatpush3.bf16.msra.mxu0 %v1520_v6  ;;  %1433 = vmatpush3.bf16.msra.mxu1 %v1520_v6 }
  0x5d   : > { %1406 = vmatprep.subr.bf16.mxu0 %v1521_v9  ;;  %1426 = vmatprep.subr.bf16.mxu1 %v1521_v9  ;;  %p1562_p1 = pneg %p1561_p13 }
  0x60   : > { %1407 = vmatpush3.bf16.msra.mxu0 %v1521_v9  ;;  %1434 = vmatpush3.bf16.msra.mxu1 %v1521_v9 }
  0x61   : > { %1408 = vmatprep.subr.bf16.mxu0 %v1522_v10  ;;  %1427 = vmatprep.subr.bf16.mxu1 %v1522_v10 }
  0x64   : > { %1409 = vmatpush3.bf16.msra.mxu0 %v1522_v10  ;;  %1435 = vmatpush3.bf16.msra.mxu1 %v1522_v10 }
  0x65   : > { %1410 = vmatprep.subr.bf16.mxu0 %v1523_v11  ;;  %1428 = vmatprep.subr.bf16.mxu1 %v1523_v11 }
  0x68   : > { %1411 = vmatpush3.bf16.msra.mxu0 %v1523_v11  ;;  %1436 = vmatpush3.bf16.msra.mxu1 %v1523_v11 }
  0x69   : > { %1412 = vmatprep.subr.bf16.mxu0 %v1524_v12  ;;  %1429 = vmatprep.subr.bf16.mxu1 %v1524_v12 }
  0x6c   : > { %1413 = vmatpush3.bf16.msra.mxu0 %v1524_v12  ;;  %1437 = vmatpush3.bf16.msra.mxu1 %v1524_v12 }
  0x6f   : > { %1415 = vmatmul.mubr.bf16.vlgmr.msra.gmra.mrb[0].mxu0 %v1526_v13  ;;  %1419 = vmatmul.mubr.bf16.vlgmr.msra.gmra.mrb[0].mxu1 %v1528_v14 }
 0x142   : > { %v1416_v19 = vpop.f32.mrb[0].mxu0  ;;  %v1420_v21 = vpop.f32.mrb[0].mxu1 }
 0x143   : > { %v760_v22 = vpop.f32.mrb[1].mxu0  ;;  %v1879_v23 = vmul.f32 %v1420_v21, %v1871_v16  ;;  %v1881_v24 = vpop.f32.mrb[1].mxu1  ;;  %v859_v56 = vmul.f32 %v1416_v19, %v1871_v16 }
 0x144   : > { %v800_v26 = vmul.f32 %v1871_v16, %v760_v22  ;;  %v1417_v27 = vpop.f32.mrb[2].mxu0  ;;  %v1421_v28 = vpop.f32.mrb[2].mxu1  ;;  %v913_v19 = vmul.f32 %v1871_v16, %v1881_v24 }
 0x145   : > { %v763_v29 = vpop.f32.mrb[3].mxu0  ;;  %v1886_v30 = vmul.f32 %v1421_v28, %v1871_v16  ;;  %v1888_v31 = vpop.f32.mrb[3].mxu1  ;;  %v886_v7 = vmul.f32 %v1417_v27, %v1871_v16 }
 0x146   : > { %v801_v32 = vmul.f32 %v800_v26, %v795_v20  ;;  %v832_v43 = vmul.f32 %v1871_v16, %v763_v29 }
 0x148   : > { %v802_v34 = vadd.f32 %v801_v32, %v798_v25 }
 0x14a   : > { %vm809_vm0 = vcmp.gt.f32.partialorder %v802_v34, %v1893_v33 }
 0x14b   : > { %v1361_v36 = vsel %vm809_vm0, 1.0, %v1649_v35 }
 0x14c   : > { %v812_v37 = vmul.f32 %v1361_v36, %v795_v20  ;;  %v820_v38 = vmax.f32 %v794_v15, %v1361_v36  ;;  %v822_v39 = vmul.f32 %v1361_v36, %v1893_v33  ;;  %v826_v40 = vpack.c.bf16 %v1361_v36, %v1361_v36 }
 0x14e   : > { %v823_v41 = vmul.f32 %v822_v39, %v795_v20  ;;  %827 = vst [vmem:[%s1819_s13] sm:$0xf] %v826_v40  ;;  %v829_v42 = vsub.f32 1.0, %v820_v38  ;;  %vm813_vm2 = vcmp.gt.f32.partialorder %v812_v37, 0.0  ;;  %v924_v37 = vstv %s922_s26  ;;  %s1968_s26 = scalar_lea.sflag [#allocation3], %s2055_s23 }
 0x14f   : > { %v818_v57 = vsel %vm813_vm2, %v817_v49, %v816_v48 }
 0x150   : > { %v824_v44 = vsub.f32 %v802_v34, %v823_v41  ;;  %v833_v45 = vmul.f32 %v832_v43, %v829_v42 }
 0x152   : > { %v831_v46 = vmul.f32 %v824_v44, %v1876_v18  ;;  %v940_v44 = vmul.f32 %v1871_v16, %v1888_v31 }
 0x154   : > { %v834_v47 = vadd.f32 %v833_v45, %v831_v46 }
 0x156   : > { %vm835_vm1 = vcmp.gt.f32.partialorder %v834_v47, %v1893_v33 }
 0x157   : > { %v1363_v50 = vsel %vm835_vm1, 1.0, %v1649_v35 }
 0x158   : > { %v838_v52 = vmul.f32 %v1363_v50, %v829_v42  ;;  %v846_v53 = vmax.f32 %v820_v38, %v1363_v50  ;;  %v848_v54 = vmul.f32 %v1363_v50, %v1893_v33  ;;  %v852_v55 = vpack.c.bf16 %v1363_v50, %v1363_v50 }
 0x15a   : > { %vm839_vm3 = vcmp.gt.f32.partialorder %v838_v52, 0.0  ;;  %v849_v58 = vmul.f32 %v848_v54, %v829_v42  ;;  %1364 = vst [vmem:[%s1819_s13 + $0x4] sm:$0xf] %v852_v55  ;;  %v856_v59 = vsub.f32 1.0, %v846_v53 }
 0x15b   : > { %v844_v60 = vsel %vm839_vm3, %v843_v51, %v818_v57  ;;  %v951_v51 = vstv %s949_s12  ;;  %s1650_s12 = smov [#allocation7]  }
 0x15c   : > { %v850_v61 = vsub.f32 %v834_v47, %v849_v58  ;;  %v860_v62 = vmul.f32 %v859_v56, %v856_v59  ;;  %s1563_s14 = sshll.u32 %s1650_s12, 4  ;;  %s1564_s14 = int_to_ptr.vmem [resolvable:$false] %s1563_s14 }
 0x15d   : > { %p1566_p6 = scmp.lt.s32.totalorder %s1959_s24, %s1564_s14 }
 0x15e   : > { %v858_v63 = vmul.f32 %v850_v61, %v1876_v18 }
 0x160   : > { %v861_v0 = vadd.f32 %v860_v62, %v858_v63  ;;  %v978_v62 = vstv %s976_s0  ;;  %s1565_s0 = scalar_lea.vmem %s1564_s14, 1024 }
 0x161   : > { %p1567_p7 = scmp.lt.s32.totalorder %s1565_s0, %s1559_s15 }
 0x162   : > { %vm862_vm4 = vcmp.gt.f32.partialorder %v861_v0, %v1893_v33 }
 0x163   : > { %v1365_v1 = vsel %vm862_vm4, 1.0, %v1649_v35  ;;  %p1568_p9 = por %p1567_p7, %p1566_p6 }
 0x164   : > { %v865_v3 = vmul.f32 %v1365_v1, %v856_v59  ;;  %v873_v4 = vmax.f32 %v846_v53, %v1365_v1  ;;  %v875_v5 = vmul.f32 %v1365_v1, %v1893_v33  ;;  %v879_v6 = vpack.c.bf16 %v1365_v1, %v1365_v1 }
 0x165   : > { %p1569_p12 = pnand %p1568_p9, %p1562_p1 }
 0x166   : > { %vm866_vm5 = vcmp.gt.f32.partialorder %v865_v3, 0.0  ;;  %v876_v8 = vmul.f32 %v875_v5, %v856_v59  ;;  %1366 = vst [vmem:[%s1819_s13 + $0x8] sm:$0xf] %v879_v6  ;;  %v883_v9 = vsub.f32 1.0, %v873_v4 }
 0x167   : > { %v871_v10 = vsel %vm866_vm5, %v870_v2, %v844_v60 }
 0x168   : > { %v877_v11 = vsub.f32 %v861_v0, %v876_v8  ;;  %v887_v12 = vmul.f32 %v886_v7, %v883_v9 }
 0x16a   : > { %v885_v13 = vmul.f32 %v877_v11, %v1876_v18 }
 0x16c   : > { %v888_v14 = vadd.f32 %v887_v12, %v885_v13 }
 0x16e   : > { %vm889_vm6 = vcmp.gt.f32.partialorder %v888_v14, %v1893_v33 }
 0x16f   : > { %v1367_v15 = vsel %vm889_vm6, 1.0, %v1649_v35 }
 0x170   : > { %v892_v20 = vmul.f32 %v1367_v15, %v883_v9  ;;  %v900_v21 = vmax.f32 %v873_v4, %v1367_v15  ;;  %v902_v22 = vmul.f32 %v1367_v15, %v1893_v33  ;;  %v906_v25 = vpack.c.bf16 %v1367_v15, %v1367_v15 }
 0x172   : > { %vm893_vm7 = vcmp.gt.f32.partialorder %v892_v20, 0.0  ;;  %v903_v26 = vmul.f32 %v902_v22, %v883_v9  ;;  %1368 = vst [vmem:[%s1819_s13 + $0xc] sm:$0xf] %v906_v25  ;;  %v910_v27 = vsub.f32 1.0, %v900_v21 }
 0x173   : > { %v898_v28 = vsel %vm893_vm7, %v897_v17, %v871_v10  ;;  %v1005_v10 = vstv %s1003_s21 }
 0x174   : > { %v904_v29 = vsub.f32 %v888_v14, %v903_v26  ;;  %v914_v32 = vmul.f32 %v913_v19, %v910_v27 }
 0x176   : > { %v912_v34 = vmul.f32 %v904_v29, %v1876_v18 }
 0x178   : > { %v915_v36 = vadd.f32 %v914_v32, %v912_v34 }
 0x17a   : > { %vm916_vm8 = vcmp.gt.f32.partialorder %v915_v36, %v1893_v33 }
 0x17b   : > { %v1369_v24 = vsel %vm916_vm8, 1.0, %v1649_v35 }
 0x17c   : > { %v919_v38 = vmul.f32 %v1369_v24, %v910_v27  ;;  %v927_v39 = vmax.f32 %v900_v21, %v1369_v24  ;;  %v929_v40 = vmul.f32 %v1369_v24, %v1893_v33  ;;  %v933_v41 = vpack.c.bf16 %v1369_v24, %v1369_v24 }
 0x17e   : > { %vm920_vm9 = vcmp.gt.f32.partialorder %v919_v38, 0.0  ;;  %v930_v42 = vmul.f32 %v929_v40, %v910_v27  ;;  %1370 = vst [vmem:[%s1819_s13 + $0x10] sm:$0xf] %v933_v41  ;;  %v937_v43 = vsub.f32 1.0, %v927_v39 }
 0x17f   : > { %v925_v45 = vsel %vm920_vm9, %v924_v37, %v898_v28 }
 0x180   : > { %v931_v46 = vsub.f32 %v915_v36, %v930_v42  ;;  %v941_v47 = vmul.f32 %v940_v44, %v937_v43 }
 0x182   : > { %v939_v48 = vmul.f32 %v931_v46, %v1876_v18 }
 0x184   : > { %v942_v49 = vadd.f32 %v941_v47, %v939_v48 }
 0x186   : > { %vm943_vm10 = vcmp.gt.f32.partialorder %v942_v49, %v1893_v33 }
 0x187   : > { %v1371_v50 = vsel %vm943_vm10, 1.0, %v1649_v35 }
 0x188   : > { %v946_v52 = vmul.f32 %v1371_v50, %v937_v43  ;;  %v954_v53 = vmax.f32 %v927_v39, %v1371_v50  ;;  %v956_v54 = vmul.f32 %v1371_v50, %v1893_v33  ;;  %v960_v55 = vpack.c.bf16 %v1371_v50, %v1371_v50 }
 0x18a   : > { %vm947_vm11 = vcmp.gt.f32.partialorder %v946_v52, 0.0  ;;  %v957_v16 = vmul.f32 %v956_v54, %v937_v43  ;;  %1372 = vst [vmem:[%s1819_s13 + $0x14] sm:$0xf] %v960_v55  ;;  %v964_v31 = vsub.f32 1.0, %v954_v53 }
 0x18b   : > { %v952_v56 = vsel %vm947_vm11, %v951_v51, %v925_v45 }
 0x18c   : > { %v958_v57 = vsub.f32 %v942_v49, %v957_v16  ;;  %v968_v58 = vmul.f32 %v1879_v23, %v964_v31 }
 0x18e   : > { %v966_v59 = vmul.f32 %v958_v57, %v1876_v18 }
 0x190   : > { %v969_v60 = vadd.f32 %v968_v58, %v966_v59 }
 0x192   : > { %vm970_vm12 = vcmp.gt.f32.partialorder %v969_v60, %v1893_v33 }
 0x193   : > { %v1373_v61 = vsel %vm970_vm12, 1.0, %v1649_v35 }
 0x194   : > { %v973_v63 = vmul.f32 %v1373_v61, %v964_v31  ;;  %v981_v0 = vmax.f32 %v954_v53, %v1373_v61  ;;  %v983_v1 = vmul.f32 %v1373_v61, %v1893_v33  ;;  %v987_v2 = vpack.c.bf16 %v1373_v61, %v1373_v61 }
 0x196   : > { %vm974_vm13 = vcmp.gt.f32.partialorder %v973_v63, 0.0  ;;  %v984_v3 = vmul.f32 %v983_v1, %v964_v31  ;;  %1374 = vst [vmem:[%s1819_s13 + $0x18] sm:$0xf] %v987_v2  ;;  %v991_v23 = vsub.f32 1.0, %v981_v0 }
 0x197   : > { %v979_v4 = vsel %vm974_vm13, %v978_v62, %v952_v56 }
 0x198   : > { %v985_v5 = vsub.f32 %v969_v60, %v984_v3  ;;  %v995_v6 = vmul.f32 %v1886_v30, %v991_v23 }
 0x19a   : > { %v993_v7 = vmul.f32 %v985_v5, %v1876_v18 }
 0x19c   : > { %v996_v8 = vadd.f32 %v995_v6, %v993_v7 }
 0x19e   : > { %vm997_vm14 = vcmp.gt.f32.partialorder %v996_v8, %v1893_v33 }
 0x19f   : > { %v1375_v9 = vsel %vm997_vm14, 1.0, %v1649_v35 }
 0x1a0   : > { %v1000_v18 = vmul.f32 %v1375_v9, %v991_v23  ;;  %v1008_v30 = vmax.f32 %v981_v0, %v1375_v9  ;;  %v1010_v11 = vmul.f32 %v1375_v9, %v1893_v33  ;;  %v1014_v12 = vpack.c.bf16 %v1375_v9, %v1375_v9 }
 0x1a2   : > { %vm1001_vm15 = vcmp.gt.f32.partialorder %v1000_v18, 0.0  ;;  %1009 = vst [vmem:[%s2030_s10] sm:$0xff] %v1008_v30  ;;  %v1011_v35 = vmul.f32 %v1010_v11, %v991_v23  ;;  %1376 = vst [vmem:[%s1819_s13 + $0x1c] sm:$0xf] %v1014_v12 }
 0x1a3   : > { %v1006_v13 = vsel %vm1001_vm15, %v1005_v10, %v979_v4 }
 0x1a4   : > { %1572 = shalt.err (!%p1569_p12)
}
 0x1a5   : > { %s1573_s13 = scalar_lea.hbm %s1957_s2, 512  ;;  %s1577_s25 = scalar_lea.hbm %s2028_s8, 1024 }
 0x1a6   : > { %p1574_p0 = scmp.ne.s32.totalorder %s1957_s2, %s1573_s13  ;;  %p1578_p5 = scmp.lt.u32.totalorder %s1957_s2, %s2028_s8 }
 0x1a7   : > { %p1579_p4 = scmp.lt.u32.totalorder %s1577_s25, %s1573_s13  ;;  %p1581_p10 = scmp.lt.u32.totalorder %s1573_s13, %s1957_s2 }
 0x1a8   : > { %p1575_p2 = pnand %p1574_p0, %p2056_p11 }
 0x1a9   : > { %p1580_p8 = por %p1579_p4, %p1578_p5 }
 0x1aa   : > { %p1576_p3 = pneg %p1575_p2 }
 0x1ab   : > { %p1582_p13 = por %p1581_p10, %p1580_p8 }
 0x1ad   : > { %p1583_p1 = pnand %p1582_p13, %p1576_p3 }
 0x1af   : > { %1586 = shalt.err (!%p1583_p1)
}
 0x1b0   : > { %s1651_s20 = smov 64   ;;  %s1652_s30 = smov 4   ;;  %1007 = vst [vmem:[%s2031_s11] sm:$0xff] %v1006_v13  ;;  %v1012_v33 = vsub.f32 %v996_v8, %v1011_v35 }
 0x1b1   : > { %1446 = dma.vmem_to_hbm [thread:$0]  (%p2056_p11), %s1959_s24, 512, %s1957_s2, %s1968_s26, %s1651_s20, %s1651_s20, %s1652_s30  }
 0x1b2   : > { %1013 = vst [vmem:[%s2029_s9] sm:$0xff] %v1012_v33 }
 0x1b3 PF: > { %p1463_p6 = scmp.ge.s32.totalorder %s1645_s22, 2  ;;  %s1108_s0 = sand.u32 1, %s1625_s17  }
 0x1b4   : > { %p2057_p7 = scmp.ne.s32.totalorder %s2045_s29, 0  ;;  %s1109_s13 = scalar_lea.sflag [#allocation3], %s1108_s0 }
 0x1b6   : > { %p1456_p9 = pnand %p1463_p6, %p2057_p7 }
 0x1b8   : > { %1620 = dma.done.wait (!%p1456_p9), %s1109_s13, 512  }
 0x1b9   : > { %1622 = vsyncadd (!%p1456_p9), %s1109_s13, 4294966784  ;;  %s27_s22 = sadd.s32 1, %s1645_s22   ;;  %s2058_s27 = sld [smem:[#allocation13_spill]] }
 0x1ba   : > { %p24_p11 = scmp.ge.s32.totalorder %s27_s22, 4   ;;  %s2059_s20 = sld [smem:[#allocation11_spill]] }
 0x1bb   : > { %s2060_s21 = sld [smem:[#allocation12_spill]]  ;;  %s2061_s17 = smov %s1629_s18 }
 0x1bc   : > { %s2062_s18 = smov %s1633_s19  ;;  %26 = sbr.rel (!%p24_p11) target bundleno = 10 (0xa), region = 158 }
 0x1bf   : > { %s2063_s19 = smov %s2058_s27 }
 0x1c3   :  { %1114 = vsyncpa [#allocation3], 1 }
 0x1c4   :  { %1116 = vsyncpa [#allocation3 + $0x1], 1 }
 0x1c5   :  { %1117 = vsyncpa [#allocation4], 1 }
 0x1c6   :  { %1119 = vsyncpa [#allocation4 + $0x1], 1 }
 0x1c7   :  { %1120 = vsyncpa [#allocation6], 1 }

</bundles_post_ra>
